<compile_context>
chip_gen: v6e
topology: v6e:2x2x1
jax: 0.10.0
libtpu: 0.0.40
codegen_flags: <defaults>
</compile_context>

<pallas_src>
import functools
import math

import jax
import jax.numpy as jnp
from jax.experimental import pallas as pl
from jax.experimental.pallas import tpu as pltpu

_EPS = 1e-5


def _layernorm(x, g, b, eps=_EPS):
    """f32 row-wise LayerNorm; usable both inside kernels and in plain JAX."""
    x = x.astype(jnp.float32)
    mean = jnp.mean(x, axis=-1, keepdims=True)
    var = jnp.mean(jnp.square(x - mean), axis=-1, keepdims=True)
    return (x - mean) * jax.lax.rsqrt(var + eps) * g + b


# ----------------------------------------------------------------------------
# Kernel 1: l_in projection + bias + positional embedding (fused)
# ----------------------------------------------------------------------------
def _in_proj_kernel(x_ref, w_ref, b_ref, pos_ref, o_ref):
    x = x_ref[0].astype(jnp.bfloat16)                                 # (S, E)
    y = jnp.dot(x, w_ref[...], preferred_element_type=jnp.float32)    # (S, D)
    o_ref[0] = (y + b_ref[...] + pos_ref[...]).astype(o_ref.dtype)


def input_projection(x, w, b, pos):
    """x: (B,S,E) -> (B,S,D) = x @ w + b + pos, one grid step per batch row."""
    B, S, E = x.shape
    D = w.shape[1]
    return pl.pallas_call(
        _in_proj_kernel,
        out_shape=jax.ShapeDtypeStruct((B, S, D), jnp.float32),
        grid=(B,),
        in_specs=[
            pl.BlockSpec((1, S, E), lambda i: (i, 0, 0)),
            pl.BlockSpec((E, D), lambda i: (0, 0)),
            pl.BlockSpec((1, D), lambda i: (0, 0)),
            pl.BlockSpec((S, D), lambda i: (0, 0)),
        ],
        out_specs=pl.BlockSpec((1, S, D), lambda i: (i, 0, 0)),
        compiler_params=pltpu.CompilerParams(dimension_semantics=("parallel",)),
    )(x, w, b.reshape(1, D), pos)


# ----------------------------------------------------------------------------
# Kernel 2: fused pre-norm self-attention block
#   out = x + Wo( MHA( LN1(x) @ Wqkv + bqkv ) ) + bo
# ----------------------------------------------------------------------------
def _attn_block_kernel(x_ref, g_ref, bln_ref, wqkv_ref, bqkv_ref, wo_ref, bo_ref,
                       m_ref, o_ref, *, nhead):
    x = x_ref[0].astype(jnp.float32)                                  # (S, D)
    S, D = x.shape
    Dh = D // nhead
    scale = 1.0 / math.sqrt(Dh)

    xn = _layernorm(x, g_ref[...], bln_ref[...])                      # (S, D) f32
    qkv = jnp.dot(xn.astype(jnp.bfloat16), wqkv_ref[...],
                  preferred_element_type=jnp.float32) + bqkv_ref[...]  # (S, 3D)

    bias = m_ref[0]                                                   # (1, S) additive
    # NOTE: a query whose keys are ALL padded gets a uniform 1/S distribution
    # (not NaN) with this additive -1e9 bias — same pooled-token behaviour as
    # PyTorch since only token 0 (never fully-masked here) is pooled.

    heads = []
    for h in range(nhead):                                            # static unroll
        qh = qkv[:, h * Dh:(h + 1) * Dh].astype(jnp.bfloat16)
        kh = qkv[:, D + h * Dh:D + (h + 1) * Dh].astype(jnp.bfloat16)
        vh = qkv[:, 2 * D + h * Dh:2 * D + (h + 1) * Dh].astype(jnp.bfloat16)
        # q @ k^T without materializing the transpose.
        s = jax.lax.dot_general(qh, kh, (((1,), (1,)), ((), ())),
                                preferred_element_type=jnp.float32)   # (S, S)
        s = s * scale + bias
        s = s - jnp.max(s, axis=-1, keepdims=True)
        p = jnp.exp(s)
        p = p * pl.reciprocal(jnp.sum(p, axis=-1, keepdims=True), approx=True)
        heads.append(jnp.dot(p.astype(jnp.bfloat16), vh,
                             preferred_element_type=jnp.float32))     # (S, Dh)
    attn = jnp.concatenate(heads, axis=-1)                            # (S, D)

    out = jnp.dot(attn.astype(jnp.bfloat16), wo_ref[...],
                  preferred_element_type=jnp.float32) + bo_ref[...]
    o_ref[0] = (x + out).astype(o_ref.dtype)                          # residual fused


def attention_block(x, p, mask_bias, nhead):
    B, S, D = x.shape
    # TODO(synk): at production scale (D=4096, H=32) the whole-array Wqkv block
    # must be K/N-tiled with a VMEM accumulator to respect v7x/v5e VMEM limits.
    return pl.pallas_call(
        functools.partial(_attn_block_kernel, nhead=nhead),
        out_shape=jax.ShapeDtypeStruct((B, S, D), jnp.float32),
        grid=(B,),
        in_specs=[
            pl.BlockSpec((1, S, D), lambda i: (i, 0, 0)),
            pl.BlockSpec((1, D), lambda i: (0, 0)),
            pl.BlockSpec((1, D), lambda i: (0, 0)),
            pl.BlockSpec((D, 3 * D), lambda i: (0, 0)),
            pl.BlockSpec((1, 3 * D), lambda i: (0, 0)),
            pl.BlockSpec((D, D), lambda i: (0, 0)),
            pl.BlockSpec((1, D), lambda i: (0, 0)),
            pl.BlockSpec((1, 1, S), lambda i: (i, 0, 0)),
        ],
        out_specs=pl.BlockSpec((1, S, D), lambda i: (i, 0, 0)),
        compiler_params=pltpu.CompilerParams(dimension_semantics=("parallel",)),
    )(x, p["ln1_g"].reshape(1, D), p["ln1_b"].reshape(1, D),
      p["wqkv"], p["bqkv"].reshape(1, 3 * D),
      p["wo"], p["bo"].reshape(1, D), mask_bias)


# ----------------------------------------------------------------------------
# Kernel 3: fused pre-norm FFN block
#   out = x + W2( relu( LN2(x) @ W1 + b1 ) ) + b2
# ----------------------------------------------------------------------------
def _ffn_block_kernel(x_ref, g_ref, bln_ref, w1_ref, b1_ref, w2_ref, b2_ref, o_ref):
    x = x_ref[...].astype(jnp.float32)                                # (tm, D)
    xn = _layernorm(x, g_ref[...], bln_ref[...])
    f = jnp.dot(xn.astype(jnp.bfloat16), w1_ref[...],
                preferred_element_type=jnp.float32) + b1_ref[...]     # (tm, F)
    f = jnp.maximum(f, 0.0)
    y = jnp.dot(f.astype(jnp.bfloat16), w2_ref[...],
                preferred_element_type=jnp.float32) + b2_ref[...]     # (tm, D)
    o_ref[...] = (x + y).astype(o_ref.dtype)                          # residual fused


def ffn_block(x, p):
    B, S, D = x.shape
    F = p["ffn1_w"].shape[1]
    M = B * S
    tm = M if M <= 256 else 256                                       # row tile
    xf = x.reshape(M, D)
    out = pl.pallas_call(
        _ffn_block_kernel,
        out_shape=jax.ShapeDtypeStruct((M, D), jnp.float32),
        grid=(pl.cdiv(M, tm),),
        in_specs=[
            pl.BlockSpec((tm, D), lambda i: (i, 0)),
            pl.BlockSpec((1, D), lambda i: (0, 0)),
            pl.BlockSpec((1, D), lambda i: (0, 0)),
            pl.BlockSpec((D, F), lambda i: (0, 0)),
            pl.BlockSpec((1, F), lambda i: (0, 0)),
            pl.BlockSpec((F, D), lambda i: (0, 0)),
            pl.BlockSpec((1, D), lambda i: (0, 0)),
        ],
        out_specs=pl.BlockSpec((tm, D), lambda i: (i, 0)),
        compiler_params=pltpu.CompilerParams(dimension_semantics=("parallel",)),
    )(xf, p["ln2_g"].reshape(1, D), p["ln2_b"].reshape(1, D),
      p["ffn1_w"], p["ffn1_b"].reshape(1, F),
      p["ffn2_w"], p["ffn2_b"].reshape(1, D))
    return out.reshape(B, S, D)


# ----------------------------------------------------------------------------
# Parameters + forward glue
# ----------------------------------------------------------------------------
def _init_linear(key, din, dout):
    kw, kb = jax.random.split(key)
    # Matmul weights stored bf16 (MXU-native, half the HBM traffic); bias f32.
    w = (jax.random.normal(kw, (din, dout), jnp.float32) / math.sqrt(din)
         ).astype(jnp.bfloat16)
    b = jax.random.normal(kb, (dout,), jnp.float32) * 0.01
    return w, b


def init_params(key, cfg):
    E, D, O = cfg["embedding_dim"], cfg["hidden_dim"], cfg["out_dim"]
    F, L, P = cfg["ffn_dim"], cfg["num_layers"], cfg["max_positions"]
    keys = jax.random.split(key, 4 + L)
    params = {}
    params["l_in_w"], params["l_in_b"] = _init_linear(keys[0], E, D)
    params["l_out_w"], params["l_out_b"] = _init_linear(keys[1], D, O)
    params["pos_emb"] = jax.random.normal(keys[2], (P, D), jnp.float32) * 0.02
    params["ln_out_g"] = jnp.ones((O,), jnp.float32)
    params["ln_out_b"] = jnp.zeros((O,), jnp.float32)
    # NOTE: self.layer_norm (hidden_dim) in the PyTorch __init__ is never used
    # in forward(), so it is intentionally not instantiated here.
    layers = []
    for l in range(L):
        lk = jax.random.split(keys[4 + l], 4)
        p = {}
        p["ln1_g"] = jnp.ones((D,), jnp.float32)
        p["ln1_b"] = jnp.zeros((D,), jnp.float32)
        p["ln2_g"] = jnp.ones((D,), jnp.float32)
        p["ln2_b"] = jnp.zeros((D,), jnp.float32)
        p["wqkv"], p["bqkv"] = _init_linear(lk[0], D, 3 * D)   # packed Q|K|V
        p["wo"], p["bo"] = _init_linear(lk[1], D, D)
        p["ffn1_w"], p["ffn1_b"] = _init_linear(lk[2], D, F)
        p["ffn2_w"], p["ffn2_b"] = _init_linear(lk[3], F, D)
        layers.append(p)
    params["layers"] = layers
    return params


def forward(params, cfg, inputs_embeds, encoder_attention_mask,
            with_last_layer_norm=False):
    B, S, _ = inputs_embeds.shape
    O, H = cfg["out_dim"], cfg["nhead"]

    # l_in + bias + positional embeddings (one fused kernel)
    h = input_projection(inputs_embeds, params["l_in_w"], params["l_in_b"],
                         params["pos_emb"][:S])

    # src_key_padding_mask = ~attention_mask : padded keys get -1e9 additive bias
    mask_bias = jnp.where(encoder_attention_mask.astype(bool), 0.0, -1e9)
    mask_bias = mask_bias.astype(jnp.float32).reshape(B, 1, S)

    for p in params["layers"]:
        h = attention_block(h, p, mask_bias, H)   # x + SA(LN1(x)), fused
        h = ffn_block(h, p)                       # x + FFN(LN2(x)), fused
    # (nn.TransformerEncoder was constructed with norm=None -> no final norm)

    # Pooler: l_out(hidden_states[:, 0:1, :]) + optional LayerNorm — plain XLA;
    # a pallas_call launch would cost orders of magnitude more than this matmul.
    pooled = h[:, 0, :]                                               # (B, D)
    out = jnp.dot(pooled.astype(jnp.bfloat16), params["l_out_w"],
                  preferred_element_type=jnp.float32) + params["l_out_b"]
    if with_last_layer_norm:
        out = _layernorm(out, params["ln_out_g"], params["ln_out_b"])
    return out.reshape(B, 1, O)

# TODO(synk): dropout inside TransformerEncoderLayer is train-only and omitted
# (this reproduces eval-mode semantics).


# ----------------------------------------------------------------------------
# Main
# ----------------------------------------------------------------------------
if __name__ == "__main__":
    cfg = dict(
        embedding_dim=64,
        hidden_dim=128,     # lane-dense D (multiple of 128)
        out_dim=64,
        nhead=4,            # Dh = 32
        num_layers=2,
        max_positions=16,
        ffn_dim=256,        # (PyTorch default is 2048; scaled down with the rest)
    )
    key = jax.random.PRNGKey(0)
    kp, kx = jax.random.split(key)
    params = init_params(kp, cfg)

    B, S = 2, 8
    inputs_embeds = jax.random.normal(kx, (B, S, cfg["embedding_dim"]), jnp.float32)
    encoder_attention_mask = jnp.ones((B, S), dtype=jnp.int32).at[1, 6:].set(0)

    @jax.jit
    def fwd(params, x, m):
        return forward(params, cfg, x, m, with_last_layer_norm=True)

    out = jax.block_until_ready(fwd(params, inputs_embeds, encoder_attention_mask))
    assert out.shape == (B, 1, cfg["out_dim"])
    assert bool(jnp.all(jnp.isfinite(out)))
    print("KERNEL_OK")
</pallas_src>

<mosaic_0001>
module attributes {stable_mosaic.version = 11 : i64} {
  func.func @_attn_block_kernel(%arg0: i32, %arg1: memref<1x8x128xf32, #tpu.memory_space<vmem>>, %arg2: memref<1x128xf32, #tpu.memory_space<vmem>>, %arg3: memref<1x128xf32, #tpu.memory_space<vmem>>, %arg4: memref<128x384xbf16, #tpu.memory_space<vmem>>, %arg5: memref<1x384xf32, #tpu.memory_space<vmem>>, %arg6: memref<128x128xbf16, #tpu.memory_space<vmem>>, %arg7: memref<1x128xf32, #tpu.memory_space<vmem>>, %arg8: memref<1x1x8xf32, #tpu.memory_space<vmem>>, %arg9: memref<1x8x128xf32, #tpu.memory_space<vmem>>) attributes {dimension_semantics = [#tpu.dimension_semantics<parallel>], iteration_bounds = array<i64: 2>, scalar_prefetch = 0 : i64, scratch_operands = 0 : i64, tpu.core_type = #tpu.core_type<tc>, window_params = [{transform_indices = @transform_0, window_bounds = array<i64: 1, 8, 128>}, {pipeline_mode = #tpu.pipeline_mode<synchronous>, transform_indices = @transform_1, window_bounds = array<i64: 1, 128>}, {pipeline_mode = #tpu.pipeline_mode<synchronous>, transform_indices = @transform_2, window_bounds = array<i64: 1, 128>}, {pipeline_mode = #tpu.pipeline_mode<synchronous>, transform_indices = @transform_3, window_bounds = array<i64: 128, 384>}, {pipeline_mode = #tpu.pipeline_mode<synchronous>, transform_indices = @transform_4, window_bounds = array<i64: 1, 384>}, {pipeline_mode = #tpu.pipeline_mode<synchronous>, transform_indices = @transform_5, window_bounds = array<i64: 128, 128>}, {pipeline_mode = #tpu.pipeline_mode<synchronous>, transform_indices = @transform_6, window_bounds = array<i64: 1, 128>}, {transform_indices = @transform_7, window_bounds = array<i64: 1, 1, 8>}, {transform_indices = @transform_8, window_bounds = array<i64: 1, 8, 128>}]} {
    %c0 = arith.constant 0 : index
    %c0_0 = arith.constant 0 : index
    %c0_1 = arith.constant 0 : index
    %0 = vector.load %arg1[%c0, %c0_0, %c0_1] : memref<1x8x128xf32, #tpu.memory_space<vmem>>, vector<1x8x128xf32>
    %1 = vector.shape_cast %0 : vector<1x8x128xf32> to vector<8x128xf32>
    %c0_2 = arith.constant 0 : index
    %c0_3 = arith.constant 0 : index
    %2 = vector.load %arg2[%c0_2, %c0_3] : memref<1x128xf32, #tpu.memory_space<vmem>>, vector<1x128xf32>
    %c0_4 = arith.constant 0 : index
    %c0_5 = arith.constant 0 : index
    %3 = vector.load %arg3[%c0_4, %c0_5] : memref<1x128xf32, #tpu.memory_space<vmem>>, vector<1x128xf32>
    %cst = arith.constant dense<0.000000e+00> : vector<8xf32>
    %4 = vector.multi_reduction <add>, %1, %cst [1] : vector<8x128xf32> to vector<8xf32>
    %5 = vector.shape_cast %4 : vector<8xf32> to vector<8x1xf32>
    %cst_6 = arith.constant 1.280000e+02 : f32
    %6 = vector.broadcast %cst_6 : f32 to vector<8x1xf32>
    %7 = arith.divf %5, %6 : vector<8x1xf32>
    %8 = vector.broadcast %7 : vector<8x1xf32> to vector<8x128xf32>
    %9 = arith.subf %1, %8 : vector<8x128xf32>
    %10 = arith.mulf %9, %9 : vector<8x128xf32>
    %cst_7 = arith.constant dense<0.000000e+00> : vector<8xf32>
    %11 = vector.multi_reduction <add>, %10, %cst_7 [1] : vector<8x128xf32> to vector<8xf32>
    %12 = vector.shape_cast %11 : vector<8xf32> to vector<8x1xf32>
    %cst_8 = arith.constant 1.280000e+02 : f32
    %13 = vector.broadcast %cst_8 : f32 to vector<8x1xf32>
    %14 = arith.divf %12, %13 : vector<8x1xf32>
    %15 = vector.broadcast %7 : vector<8x1xf32> to vector<8x128xf32>
    %16 = arith.subf %1, %15 : vector<8x128xf32>
    %cst_9 = arith.constant 9.99999974E-6 : f32
    %17 = vector.broadcast %cst_9 : f32 to vector<8x1xf32>
    %18 = arith.addf %14, %17 : vector<8x1xf32>
    %19 = math.rsqrt %18 : vector<8x1xf32>
    %20 = vector.broadcast %19 : vector<8x1xf32> to vector<8x128xf32>
    %21 = arith.mulf %16, %20 : vector<8x128xf32>
    %22 = vector.broadcast %2 : vector<1x128xf32> to vector<8x128xf32>
    %23 = arith.mulf %21, %22 : vector<8x128xf32>
    %24 = vector.broadcast %3 : vector<1x128xf32> to vector<8x128xf32>
    %25 = arith.addf %23, %24 : vector<8x128xf32>
    %26 = arith.truncf %25 : vector<8x128xf32> to vector<8x128xbf16>
    %c0_10 = arith.constant 0 : index
    %c0_11 = arith.constant 0 : index
    %27 = vector.load %arg4[%c0_10, %c0_11] : memref<128x384xbf16, #tpu.memory_space<vmem>>, vector<128x384xbf16>
    %cst_12 = arith.constant dense<0.000000e+00> : vector<8x384xf32>
    %28 = tpu.matmul %26, %27, %cst_12 {dimension_numbers = #tpu.dot_dimension_numbers<[1], [0], [0], [1], [0, 0, 1, 1], [], []>} : vector<8x128xbf16>, vector<128x384xbf16>, vector<8x384xf32> -> vector<8x384xf32>
    %c0_13 = arith.constant 0 : index
    %c0_14 = arith.constant 0 : index
    %29 = vector.load %arg5[%c0_13, %c0_14] : memref<1x384xf32, #tpu.memory_space<vmem>>, vector<1x384xf32>
    %30 = vector.broadcast %29 : vector<1x384xf32> to vector<8x384xf32>
    %31 = arith.addf %28, %30 : vector<8x384xf32>
    %c0_15 = arith.constant 0 : index
    %c0_16 = arith.constant 0 : index
    %c0_17 = arith.constant 0 : index
    %32 = vector.load %arg8[%c0_15, %c0_16, %c0_17] : memref<1x1x8xf32, #tpu.memory_space<vmem>>, vector<1x1x8xf32>
    %33 = vector.shape_cast %32 : vector<1x1x8xf32> to vector<1x8xf32>
    %34 = vector.extract_strided_slice %31 {offsets = [0, 0], sizes = [8, 32], strides = [1, 1]} : vector<8x384xf32> to vector<8x32xf32>
    %35 = arith.truncf %34 : vector<8x32xf32> to vector<8x32xbf16>
    %36 = vector.extract_strided_slice %31 {offsets = [0, 128], sizes = [8, 32], strides = [1, 1]} : vector<8x384xf32> to vector<8x32xf32>
    %37 = arith.truncf %36 : vector<8x32xf32> to vector<8x32xbf16>
    %38 = vector.extract_strided_slice %31 {offsets = [0, 256], sizes = [8, 32], strides = [1, 1]} : vector<8x384xf32> to vector<8x32xf32>
    %39 = arith.truncf %38 : vector<8x32xf32> to vector<8x32xbf16>
    %cst_18 = arith.constant dense<0.000000e+00> : vector<8x8xf32>
    %40 = tpu.matmul %35, %37, %cst_18 {dimension_numbers = #tpu.dot_dimension_numbers<[1], [1], [0], [0], [0, 0, 1, 0], [], []>} : vector<8x32xbf16>, vector<8x32xbf16>, vector<8x8xf32> -> vector<8x8xf32>
    %cst_19 = arith.constant 0.176776692 : f32
    %41 = vector.broadcast %cst_19 : f32 to vector<8x8xf32>
    %42 = arith.mulf %40, %41 : vector<8x8xf32>
    %43 = vector.broadcast %33 : vector<1x8xf32> to vector<8x8xf32>
    %44 = arith.addf %42, %43 : vector<8x8xf32>
    %cst_20 = arith.constant dense<0xFF800000> : vector<8xf32>
    %45 = vector.multi_reduction <maximumf>, %44, %cst_20 [1] : vector<8x8xf32> to vector<8xf32>
    %46 = vector.shape_cast %45 : vector<8xf32> to vector<8x1xf32>
    %47 = vector.broadcast %46 : vector<8x1xf32> to vector<8x8xf32>
    %48 = arith.subf %44, %47 : vector<8x8xf32>
    %49 = math.exp %48 : vector<8x8xf32>
    %cst_21 = arith.constant dense<0.000000e+00> : vector<8xf32>
    %50 = vector.multi_reduction <add>, %49, %cst_21 [1] : vector<8x8xf32> to vector<8xf32>
    %51 = vector.shape_cast %50 : vector<8xf32> to vector<8x1xf32>
    %52 = tpu.reciprocal %51 {approx = true} : vector<8x1xf32> -> vector<8x1xf32>
    %53 = vector.broadcast %52 : vector<8x1xf32> to vector<8x8xf32>
    %54 = arith.mulf %49, %53 : vector<8x8xf32>
    %55 = arith.truncf %54 : vector<8x8xf32> to vector<8x8xbf16>
    %cst_22 = arith.constant dense<0.000000e+00> : vector<8x32xf32>
    %56 = tpu.matmul %55, %39, %cst_22 {dimension_numbers = #tpu.dot_dimension_numbers<[1], [0], [0], [1], [0, 0, 1, 1], [], []>} : vector<8x8xbf16>, vector<8x32xbf16>, vector<8x32xf32> -> vector<8x32xf32>
    %57 = vector.extract_strided_slice %31 {offsets = [0, 32], sizes = [8, 32], strides = [1, 1]} : vector<8x384xf32> to vector<8x32xf32>
    %58 = arith.truncf %57 : vector<8x32xf32> to vector<8x32xbf16>
    %59 = vector.extract_strided_slice %31 {offsets = [0, 160], sizes = [8, 32], strides = [1, 1]} : vector<8x384xf32> to vector<8x32xf32>
    %60 = arith.truncf %59 : vector<8x32xf32> to vector<8x32xbf16>
    %61 = vector.extract_strided_slice %31 {offsets = [0, 288], sizes = [8, 32], strides = [1, 1]} : vector<8x384xf32> to vector<8x32xf32>
    %62 = arith.truncf %61 : vector<8x32xf32> to vector<8x32xbf16>
    %cst_23 = arith.constant dense<0.000000e+00> : vector<8x8xf32>
    %63 = tpu.matmul %58, %60, %cst_23 {dimension_numbers = #tpu.dot_dimension_numbers<[1], [1], [0], [0], [0, 0, 1, 0], [], []>} : vector<8x32xbf16>, vector<8x32xbf16>, vector<8x8xf32> -> vector<8x8xf32>
    %cst_24 = arith.constant 0.176776692 : f32
    %64 = vector.broadcast %cst_24 : f32 to vector<8x8xf32>
    %65 = arith.mulf %63, %64 : vector<8x8xf32>
    %66 = vector.broadcast %33 : vector<1x8xf32> to vector<8x8xf32>
    %67 = arith.addf %65, %66 : vector<8x8xf32>
    %cst_25 = arith.constant dense<0xFF800000> : vector<8xf32>
    %68 = vector.multi_reduction <maximumf>, %67, %cst_25 [1] : vector<8x8xf32> to vector<8xf32>
    %69 = vector.shape_cast %68 : vector<8xf32> to vector<8x1xf32>
    %70 = vector.broadcast %69 : vector<8x1xf32> to vector<8x8xf32>
    %71 = arith.subf %67, %70 : vector<8x8xf32>
    %72 = math.exp %71 : vector<8x8xf32>
    %cst_26 = arith.constant dense<0.000000e+00> : vector<8xf32>
    %73 = vector.multi_reduction <add>, %72, %cst_26 [1] : vector<8x8xf32> to vector<8xf32>
    %74 = vector.shape_cast %73 : vector<8xf32> to vector<8x1xf32>
    %75 = tpu.reciprocal %74 {approx = true} : vector<8x1xf32> -> vector<8x1xf32>
    %76 = vector.broadcast %75 : vector<8x1xf32> to vector<8x8xf32>
    %77 = arith.mulf %72, %76 : vector<8x8xf32>
    %78 = arith.truncf %77 : vector<8x8xf32> to vector<8x8xbf16>
    %cst_27 = arith.constant dense<0.000000e+00> : vector<8x32xf32>
    %79 = tpu.matmul %78, %62, %cst_27 {dimension_numbers = #tpu.dot_dimension_numbers<[1], [0], [0], [1], [0, 0, 1, 1], [], []>} : vector<8x8xbf16>, vector<8x32xbf16>, vector<8x32xf32> -> vector<8x32xf32>
    %80 = vector.extract_strided_slice %31 {offsets = [0, 64], sizes = [8, 32], strides = [1, 1]} : vector<8x384xf32> to vector<8x32xf32>
    %81 = arith.truncf %80 : vector<8x32xf32> to vector<8x32xbf16>
    %82 = vector.extract_strided_slice %31 {offsets = [0, 192], sizes = [8, 32], strides = [1, 1]} : vector<8x384xf32> to vector<8x32xf32>
    %83 = arith.truncf %82 : vector<8x32xf32> to vector<8x32xbf16>
    %84 = vector.extract_strided_slice %31 {offsets = [0, 320], sizes = [8, 32], strides = [1, 1]} : vector<8x384xf32> to vector<8x32xf32>
    %85 = arith.truncf %84 : vector<8x32xf32> to vector<8x32xbf16>
    %cst_28 = arith.constant dense<0.000000e+00> : vector<8x8xf32>
    %86 = tpu.matmul %81, %83, %cst_28 {dimension_numbers = #tpu.dot_dimension_numbers<[1], [1], [0], [0], [0, 0, 1, 0], [], []>} : vector<8x32xbf16>, vector<8x32xbf16>, vector<8x8xf32> -> vector<8x8xf32>
    %cst_29 = arith.constant 0.176776692 : f32
    %87 = vector.broadcast %cst_29 : f32 to vector<8x8xf32>
    %88 = arith.mulf %86, %87 : vector<8x8xf32>
    %89 = vector.broadcast %33 : vector<1x8xf32> to vector<8x8xf32>
    %90 = arith.addf %88, %89 : vector<8x8xf32>
    %cst_30 = arith.constant dense<0xFF800000> : vector<8xf32>
    %91 = vector.multi_reduction <maximumf>, %90, %cst_30 [1] : vector<8x8xf32> to vector<8xf32>
    %92 = vector.shape_cast %91 : vector<8xf32> to vector<8x1xf32>
    %93 = vector.broadcast %92 : vector<8x1xf32> to vector<8x8xf32>
    %94 = arith.subf %90, %93 : vector<8x8xf32>
    %95 = math.exp %94 : vector<8x8xf32>
    %cst_31 = arith.constant dense<0.000000e+00> : vector<8xf32>
    %96 = vector.multi_reduction <add>, %95, %cst_31 [1] : vector<8x8xf32> to vector<8xf32>
    %97 = vector.shape_cast %96 : vector<8xf32> to vector<8x1xf32>
    %98 = tpu.reciprocal %97 {approx = true} : vector<8x1xf32> -> vector<8x1xf32>
    %99 = vector.broadcast %98 : vector<8x1xf32> to vector<8x8xf32>
    %100 = arith.mulf %95, %99 : vector<8x8xf32>
    %101 = arith.truncf %100 : vector<8x8xf32> to vector<8x8xbf16>
    %cst_32 = arith.constant dense<0.000000e+00> : vector<8x32xf32>
    %102 = tpu.matmul %101, %85, %cst_32 {dimension_numbers = #tpu.dot_dimension_numbers<[1], [0], [0], [1], [0, 0, 1, 1], [], []>} : vector<8x8xbf16>, vector<8x32xbf16>, vector<8x32xf32> -> vector<8x32xf32>
    %103 = vector.extract_strided_slice %31 {offsets = [0, 96], sizes = [8, 32], strides = [1, 1]} : vector<8x384xf32> to vector<8x32xf32>
    %104 = arith.truncf %103 : vector<8x32xf32> to vector<8x32xbf16>
    %105 = vector.extract_strided_slice %31 {offsets = [0, 224], sizes = [8, 32], strides = [1, 1]} : vector<8x384xf32> to vector<8x32xf32>
    %106 = arith.truncf %105 : vector<8x32xf32> to vector<8x32xbf16>
    %107 = vector.extract_strided_slice %31 {offsets = [0, 352], sizes = [8, 32], strides = [1, 1]} : vector<8x384xf32> to vector<8x32xf32>
    %108 = arith.truncf %107 : vector<8x32xf32> to vector<8x32xbf16>
    %cst_33 = arith.constant dense<0.000000e+00> : vector<8x8xf32>
    %109 = tpu.matmul %104, %106, %cst_33 {dimension_numbers = #tpu.dot_dimension_numbers<[1], [1], [0], [0], [0, 0, 1, 0], [], []>} : vector<8x32xbf16>, vector<8x32xbf16>, vector<8x8xf32> -> vector<8x8xf32>
    %cst_34 = arith.constant 0.176776692 : f32
    %110 = vector.broadcast %cst_34 : f32 to vector<8x8xf32>
    %111 = arith.mulf %109, %110 : vector<8x8xf32>
    %112 = vector.broadcast %33 : vector<1x8xf32> to vector<8x8xf32>
    %113 = arith.addf %111, %112 : vector<8x8xf32>
    %cst_35 = arith.constant dense<0xFF800000> : vector<8xf32>
    %114 = vector.multi_reduction <maximumf>, %113, %cst_35 [1] : vector<8x8xf32> to vector<8xf32>
    %115 = vector.shape_cast %114 : vector<8xf32> to vector<8x1xf32>
    %116 = vector.broadcast %115 : vector<8x1xf32> to vector<8x8xf32>
    %117 = arith.subf %113, %116 : vector<8x8xf32>
    %118 = math.exp %117 : vector<8x8xf32>
    %cst_36 = arith.constant dense<0.000000e+00> : vector<8xf32>
    %119 = vector.multi_reduction <add>, %118, %cst_36 [1] : vector<8x8xf32> to vector<8xf32>
    %120 = vector.shape_cast %119 : vector<8xf32> to vector<8x1xf32>
    %121 = tpu.reciprocal %120 {approx = true} : vector<8x1xf32> -> vector<8x1xf32>
    %122 = vector.broadcast %121 : vector<8x1xf32> to vector<8x8xf32>
    %123 = arith.mulf %118, %122 : vector<8x8xf32>
    %124 = arith.truncf %123 : vector<8x8xf32> to vector<8x8xbf16>
    %cst_37 = arith.constant dense<0.000000e+00> : vector<8x32xf32>
    %125 = tpu.matmul %124, %108, %cst_37 {dimension_numbers = #tpu.dot_dimension_numbers<[1], [0], [0], [1], [0, 0, 1, 1], [], []>} : vector<8x8xbf16>, vector<8x32xbf16>, vector<8x32xf32> -> vector<8x32xf32>
    %126 = tpu.concatenate %56, %79, %102, %125 in 1 : vector<8x32xf32>, vector<8x32xf32>, vector<8x32xf32>, vector<8x32xf32> -> vector<8x128xf32>
    %127 = arith.truncf %126 : vector<8x128xf32> to vector<8x128xbf16>
    %c0_38 = arith.constant 0 : index
    %c0_39 = arith.constant 0 : index
    %128 = vector.load %arg6[%c0_38, %c0_39] : memref<128x128xbf16, #tpu.memory_space<vmem>>, vector<128x128xbf16>
    %cst_40 = arith.constant dense<0.000000e+00> : vector<8x128xf32>
    %129 = tpu.matmul %127, %128, %cst_40 {dimension_numbers = #tpu.dot_dimension_numbers<[1], [0], [0], [1], [0, 0, 1, 1], [], []>} : vector<8x128xbf16>, vector<128x128xbf16>, vector<8x128xf32> -> vector<8x128xf32>
    %c0_41 = arith.constant 0 : index
    %c0_42 = arith.constant 0 : index
    %130 = vector.load %arg7[%c0_41, %c0_42] : memref<1x128xf32, #tpu.memory_space<vmem>>, vector<1x128xf32>
    %131 = vector.broadcast %130 : vector<1x128xf32> to vector<8x128xf32>
    %132 = arith.addf %129, %131 : vector<8x128xf32>
    %133 = arith.addf %1, %132 : vector<8x128xf32>
    %c0_43 = arith.constant 0 : index
    %c0_44 = arith.constant 0 : index
    %c0_45 = arith.constant 0 : index
    %134 = vector.load %arg9[%c0_43, %c0_44, %c0_45] : memref<1x8x128xf32, #tpu.memory_space<vmem>>, vector<1x8x128xf32>
    %135 = vector.shape_cast %134 : vector<1x8x128xf32> to vector<8x128xf32>
    %136 = vector.shape_cast %133 : vector<8x128xf32> to vector<1x8x128xf32>
    tpu.vector_store %arg9[%c0_43, %c0_44, %c0_45], %136 {strides = array<i32>} : memref<1x8x128xf32, #tpu.memory_space<vmem>>, vector<1x8x128xf32>,
    return
  }
  func.func @transform_0(%arg0: i32) -> (i32, i32, i32) {
    %c0_i32 = arith.constant 0 : i32
    %c0_i32_0 = arith.constant 0 : i32
    %c0_i32_1 = arith.constant 0 : i32
    return %arg0, %c0_i32, %c0_i32_0 : i32, i32, i32
  }
  func.func @transform_1(%arg0: i32) -> (i32, i32) {
    %c0_i32 = arith.constant 0 : i32
    %c0_i32_0 = arith.constant 0 : i32
    %c0_i32_1 = arith.constant 0 : i32
    return %c0_i32, %c0_i32_0 : i32, i32
  }
  func.func @transform_2(%arg0: i32) -> (i32, i32) {
    %c0_i32 = arith.constant 0 : i32
    %c0_i32_0 = arith.constant 0 : i32
    %c0_i32_1 = arith.constant 0 : i32
    return %c0_i32, %c0_i32_0 : i32, i32
  }
  func.func @transform_3(%arg0: i32) -> (i32, i32) {
    %c0_i32 = arith.constant 0 : i32
    %c0_i32_0 = arith.constant 0 : i32
    %c0_i32_1 = arith.constant 0 : i32
    return %c0_i32, %c0_i32_0 : i32, i32
  }
  func.func @transform_4(%arg0: i32) -> (i32, i32) {
    %c0_i32 = arith.constant 0 : i32
    %c0_i32_0 = arith.constant 0 : i32
    %c0_i32_1 = arith.constant 0 : i32
    return %c0_i32, %c0_i32_0 : i32, i32
  }
  func.func @transform_5(%arg0: i32) -> (i32, i32) {
    %c0_i32 = arith.constant 0 : i32
    %c0_i32_0 = arith.constant 0 : i32
    %c0_i32_1 = arith.constant 0 : i32
    return %c0_i32, %c0_i32_0 : i32, i32
  }
  func.func @transform_6(%arg0: i32) -> (i32, i32) {
    %c0_i32 = arith.constant 0 : i32
    %c0_i32_0 = arith.constant 0 : i32
    %c0_i32_1 = arith.constant 0 : i32
    return %c0_i32, %c0_i32_0 : i32, i32
  }
  func.func @transform_7(%arg0: i32) -> (i32, i32, i32) {
    %c0_i32 = arith.constant 0 : i32
    %c0_i32_0 = arith.constant 0 : i32
    %c0_i32_1 = arith.constant 0 : i32
    return %arg0, %c0_i32, %c0_i32_0 : i32, i32, i32
  }
  func.func @transform_8(%arg0: i32) -> (i32, i32, i32) {
    %c0_i32 = arith.constant 0 : i32
    %c0_i32_0 = arith.constant 0 : i32
    %c0_i32_1 = arith.constant 0 : i32
    return %arg0, %c0_i32, %c0_i32_0 : i32, i32, i32
  }
}

module attributes {stable_mosaic.version = 11 : i64} {
  func.func @_in_proj_kernel(%arg0: i32, %arg1: memref<1x8x64xf32, #tpu.memory_space<vmem>>, %arg2: memref<64x128xbf16, #tpu.memory_space<vmem>>, %arg3: memref<1x128xf32, #tpu.memory_space<vmem>>, %arg4: memref<8x128xf32, #tpu.memory_space<vmem>>, %arg5: memref<1x8x128xf32, #tpu.memory_space<vmem>>) attributes {dimension_semantics = [#tpu.dimension_semantics<parallel>], iteration_bounds = array<i64: 2>, scalar_prefetch = 0 : i64, scratch_operands = 0 : i64, tpu.core_type = #tpu.core_type<tc>, window_params = [{transform_indices = @transform_0, window_bounds = array<i64: 1, 8, 64>}, {pipeline_mode = #tpu.pipeline_mode<synchronous>, transform_indices = @transform_1, window_bounds = array<i64: 64, 128>}, {pipeline_mode = #tpu.pipeline_mode<synchronous>, transform_indices = @transform_2, window_bounds = array<i64: 1, 128>}, {pipeline_mode = #tpu.pipeline_mode<synchronous>, transform_indices = @transform_3, window_bounds = array<i64: 8, 128>}, {transform_indices = @transform_4, window_bounds = array<i64: 1, 8, 128>}]} {
    %c0 = arith.constant 0 : index
    %c0_0 = arith.constant 0 : index
    %c0_1 = arith.constant 0 : index
    %0 = vector.load %arg1[%c0, %c0_0, %c0_1] : memref<1x8x64xf32, #tpu.memory_space<vmem>>, vector<1x8x64xf32>
    %1 = vector.shape_cast %0 : vector<1x8x64xf32> to vector<8x64xf32>
    %2 = arith.truncf %1 : vector<8x64xf32> to vector<8x64xbf16>
    %c0_2 = arith.constant 0 : index
    %c0_3 = arith.constant 0 : index
    %3 = vector.load %arg2[%c0_2, %c0_3] : memref<64x128xbf16, #tpu.memory_space<vmem>>, vector<64x128xbf16>
    %cst = arith.constant dense<0.000000e+00> : vector<8x128xf32>
    %4 = tpu.matmul %2, %3, %cst {dimension_numbers = #tpu.dot_dimension_numbers<[1], [0], [0], [1], [0, 0, 1, 1], [], []>} : vector<8x64xbf16>, vector<64x128xbf16>, vector<8x128xf32> -> vector<8x128xf32>
    %c0_4 = arith.constant 0 : index
    %c0_5 = arith.constant 0 : index
    %5 = vector.load %arg3[%c0_4, %c0_5] : memref<1x128xf32, #tpu.memory_space<vmem>>, vector<1x128xf32>
    %6 = vector.broadcast %5 : vector<1x128xf32> to vector<8x128xf32>
    %7 = arith.addf %4, %6 : vector<8x128xf32>
    %c0_6 = arith.constant 0 : index
    %c0_7 = arith.constant 0 : index
    %8 = vector.load %arg4[%c0_6, %c0_7] : memref<8x128xf32, #tpu.memory_space<vmem>>, vector<8x128xf32>
    %9 = arith.addf %7, %8 : vector<8x128xf32>
    %c0_8 = arith.constant 0 : index
    %c0_9 = arith.constant 0 : index
    %c0_10 = arith.constant 0 : index
    %10 = vector.load %arg5[%c0_8, %c0_9, %c0_10] : memref<1x8x128xf32, #tpu.memory_space<vmem>>, vector<1x8x128xf32>
    %11 = vector.shape_cast %10 : vector<1x8x128xf32> to vector<8x128xf32>
    %12 = vector.shape_cast %9 : vector<8x128xf32> to vector<1x8x128xf32>
    tpu.vector_store %arg5[%c0_8, %c0_9, %c0_10], %12 {strides = array<i32>} : memref<1x8x128xf32, #tpu.memory_space<vmem>>, vector<1x8x128xf32>,
    return
  }
  func.func @transform_0(%arg0: i32) -> (i32, i32, i32) {
    %c0_i32 = arith.constant 0 : i32
    %c0_i32_0 = arith.constant 0 : i32
    %c0_i32_1 = arith.constant 0 : i32
    return %arg0, %c0_i32, %c0_i32_0 : i32, i32, i32
  }
  func.func @transform_1(%arg0: i32) -> (i32, i32) {
    %c0_i32 = arith.constant 0 : i32
    %c0_i32_0 = arith.constant 0 : i32
    %c0_i32_1 = arith.constant 0 : i32
    return %c0_i32, %c0_i32_0 : i32, i32
  }
  func.func @transform_2(%arg0: i32) -> (i32, i32) {
    %c0_i32 = arith.constant 0 : i32
    %c0_i32_0 = arith.constant 0 : i32
    %c0_i32_1 = arith.constant 0 : i32
    return %c0_i32, %c0_i32_0 : i32, i32
  }
  func.func @transform_3(%arg0: i32) -> (i32, i32) {
    %c0_i32 = arith.constant 0 : i32
    %c0_i32_0 = arith.constant 0 : i32
    %c0_i32_1 = arith.constant 0 : i32
    return %c0_i32, %c0_i32_0 : i32, i32
  }
  func.func @transform_4(%arg0: i32) -> (i32, i32, i32) {
    %c0_i32 = arith.constant 0 : i32
    %c0_i32_0 = arith.constant 0 : i32
    %c0_i32_1 = arith.constant 0 : i32
    return %arg0, %c0_i32, %c0_i32_0 : i32, i32, i32
  }
}

module attributes {stable_mosaic.version = 11 : i64} {
  func.func @_ffn_block_kernel(%arg0: i32, %arg1: memref<16x128xf32, #tpu.memory_space<vmem>>, %arg2: memref<1x128xf32, #tpu.memory_space<vmem>>, %arg3: memref<1x128xf32, #tpu.memory_space<vmem>>, %arg4: memref<128x256xbf16, #tpu.memory_space<vmem>>, %arg5: memref<1x256xf32, #tpu.memory_space<vmem>>, %arg6: memref<256x128xbf16, #tpu.memory_space<vmem>>, %arg7: memref<1x128xf32, #tpu.memory_space<vmem>>, %arg8: memref<16x128xf32, #tpu.memory_space<vmem>>) attributes {dimension_semantics = [#tpu.dimension_semantics<parallel>], iteration_bounds = array<i64: 1>, scalar_prefetch = 0 : i64, scratch_operands = 0 : i64, tpu.core_type = #tpu.core_type<tc>, window_params = [{transform_indices = @transform_0, window_bounds = array<i64: 16, 128>}, {pipeline_mode = #tpu.pipeline_mode<synchronous>, transform_indices = @transform_1, window_bounds = array<i64: 1, 128>}, {pipeline_mode = #tpu.pipeline_mode<synchronous>, transform_indices = @transform_2, window_bounds = array<i64: 1, 128>}, {pipeline_mode = #tpu.pipeline_mode<synchronous>, transform_indices = @transform_3, window_bounds = array<i64: 128, 256>}, {pipeline_mode = #tpu.pipeline_mode<synchronous>, transform_indices = @transform_4, window_bounds = array<i64: 1, 256>}, {pipeline_mode = #tpu.pipeline_mode<synchronous>, transform_indices = @transform_5, window_bounds = array<i64: 256, 128>}, {pipeline_mode = #tpu.pipeline_mode<synchronous>, transform_indices = @transform_6, window_bounds = array<i64: 1, 128>}, {transform_indices = @transform_7, window_bounds = array<i64: 16, 128>}]} {
    %c0 = arith.constant 0 : index
    %c0_0 = arith.constant 0 : index
    %0 = vector.load %arg1[%c0, %c0_0] : memref<16x128xf32, #tpu.memory_space<vmem>>, vector<16x128xf32>
    %c0_1 = arith.constant 0 : index
    %c0_2 = arith.constant 0 : index
    %1 = vector.load %arg2[%c0_1, %c0_2] : memref<1x128xf32, #tpu.memory_space<vmem>>, vector<1x128xf32>
    %c0_3 = arith.constant 0 : index
    %c0_4 = arith.constant 0 : index
    %2 = vector.load %arg3[%c0_3, %c0_4] : memref<1x128xf32, #tpu.memory_space<vmem>>, vector<1x128xf32>
    %cst = arith.constant dense<0.000000e+00> : vector<16xf32>
    %3 = vector.multi_reduction <add>, %0, %cst [1] : vector<16x128xf32> to vector<16xf32>
    %4 = vector.shape_cast %3 : vector<16xf32> to vector<16x1xf32>
    %cst_5 = arith.constant 1.280000e+02 : f32
    %5 = vector.broadcast %cst_5 : f32 to vector<16x1xf32>
    %6 = arith.divf %4, %5 : vector<16x1xf32>
    %7 = vector.broadcast %6 : vector<16x1xf32> to vector<16x128xf32>
    %8 = arith.subf %0, %7 : vector<16x128xf32>
    %9 = arith.mulf %8, %8 : vector<16x128xf32>
    %cst_6 = arith.constant dense<0.000000e+00> : vector<16xf32>
    %10 = vector.multi_reduction <add>, %9, %cst_6 [1] : vector<16x128xf32> to vector<16xf32>
    %11 = vector.shape_cast %10 : vector<16xf32> to vector<16x1xf32>
    %cst_7 = arith.constant 1.280000e+02 : f32
    %12 = vector.broadcast %cst_7 : f32 to vector<16x1xf32>
    %13 = arith.divf %11, %12 : vector<16x1xf32>
    %14 = vector.broadcast %6 : vector<16x1xf32> to vector<16x128xf32>
    %15 = arith.subf %0, %14 : vector<16x128xf32>
    %cst_8 = arith.constant 9.99999974E-6 : f32
    %16 = vector.broadcast %cst_8 : f32 to vector<16x1xf32>
    %17 = arith.addf %13, %16 : vector<16x1xf32>
    %18 = math.rsqrt %17 : vector<16x1xf32>
    %19 = vector.broadcast %18 : vector<16x1xf32> to vector<16x128xf32>
    %20 = arith.mulf %15, %19 : vector<16x128xf32>
    %21 = vector.broadcast %1 : vector<1x128xf32> to vector<16x128xf32>
    %22 = arith.mulf %20, %21 : vector<16x128xf32>
    %23 = vector.broadcast %2 : vector<1x128xf32> to vector<16x128xf32>
    %24 = arith.addf %22, %23 : vector<16x128xf32>
    %25 = arith.truncf %24 : vector<16x128xf32> to vector<16x128xbf16>
    %c0_9 = arith.constant 0 : index
    %c0_10 = arith.constant 0 : index
    %26 = vector.load %arg4[%c0_9, %c0_10] : memref<128x256xbf16, #tpu.memory_space<vmem>>, vector<128x256xbf16>
    %cst_11 = arith.constant dense<0.000000e+00> : vector<16x256xf32>
    %27 = tpu.matmul %25, %26, %cst_11 {dimension_numbers = #tpu.dot_dimension_numbers<[1], [0], [0], [1], [0, 0, 1, 1], [], []>} : vector<16x128xbf16>, vector<128x256xbf16>, vector<16x256xf32> -> vector<16x256xf32>
    %c0_12 = arith.constant 0 : index
    %c0_13 = arith.constant 0 : index
    %28 = vector.load %arg5[%c0_12, %c0_13] : memref<1x256xf32, #tpu.memory_space<vmem>>, vector<1x256xf32>
    %29 = vector.broadcast %28 : vector<1x256xf32> to vector<16x256xf32>
    %30 = arith.addf %27, %29 : vector<16x256xf32>
    %cst_14 = arith.constant 0.000000e+00 : f32
    %31 = vector.broadcast %cst_14 : f32 to vector<16x256xf32>
    %32 = arith.maximumf %30, %31 : vector<16x256xf32>
    %33 = arith.truncf %32 : vector<16x256xf32> to vector<16x256xbf16>
    %c0_15 = arith.constant 0 : index
    %c0_16 = arith.constant 0 : index
    %34 = vector.load %arg6[%c0_15, %c0_16] : memref<256x128xbf16, #tpu.memory_space<vmem>>, vector<256x128xbf16>
    %cst_17 = arith.constant dense<0.000000e+00> : vector<16x128xf32>
    %35 = tpu.matmul %33, %34, %cst_17 {dimension_numbers = #tpu.dot_dimension_numbers<[1], [0], [0], [1], [0, 0, 1, 1], [], []>} : vector<16x256xbf16>, vector<256x128xbf16>, vector<16x128xf32> -> vector<16x128xf32>
    %c0_18 = arith.constant 0 : index
    %c0_19 = arith.constant 0 : index
    %36 = vector.load %arg7[%c0_18, %c0_19] : memref<1x128xf32, #tpu.memory_space<vmem>>, vector<1x128xf32>
    %37 = vector.broadcast %36 : vector<1x128xf32> to vector<16x128xf32>
    %38 = arith.addf %35, %37 : vector<16x128xf32>
    %39 = arith.addf %0, %38 : vector<16x128xf32>
    %c0_20 = arith.constant 0 : index
    %c0_21 = arith.constant 0 : index
    %40 = vector.load %arg8[%c0_20, %c0_21] : memref<16x128xf32, #tpu.memory_space<vmem>>, vector<16x128xf32>
    tpu.vector_store %arg8[%c0_20, %c0_21], %39 {strides = array<i32>} : memref<16x128xf32, #tpu.memory_space<vmem>>, vector<16x128xf32>,
    return
  }
  func.func @transform_0(%arg0: i32) -> (i32, i32) {
    %c0_i32 = arith.constant 0 : i32
    %c0_i32_0 = arith.constant 0 : i32
    return %arg0, %c0_i32 : i32, i32
  }
  func.func @transform_1(%arg0: i32) -> (i32, i32) {
    %c0_i32 = arith.constant 0 : i32
    %c0_i32_0 = arith.constant 0 : i32
    %c0_i32_1 = arith.constant 0 : i32
    return %c0_i32, %c0_i32_0 : i32, i32
  }
  func.func @transform_2(%arg0: i32) -> (i32, i32) {
    %c0_i32 = arith.constant 0 : i32
    %c0_i32_0 = arith.constant 0 : i32
    %c0_i32_1 = arith.constant 0 : i32
    return %c0_i32, %c0_i32_0 : i32, i32
  }
  func.func @transform_3(%arg0: i32) -> (i32, i32) {
    %c0_i32 = arith.constant 0 : i32
    %c0_i32_0 = arith.constant 0 : i32
    %c0_i32_1 = arith.constant 0 : i32
    return %c0_i32, %c0_i32_0 : i32, i32
  }
  func.func @transform_4(%arg0: i32) -> (i32, i32) {
    %c0_i32 = arith.constant 0 : i32
    %c0_i32_0 = arith.constant 0 : i32
    %c0_i32_1 = arith.constant 0 : i32
    return %c0_i32, %c0_i32_0 : i32, i32
  }
  func.func @transform_5(%arg0: i32) -> (i32, i32) {
    %c0_i32 = arith.constant 0 : i32
    %c0_i32_0 = arith.constant 0 : i32
    %c0_i32_1 = arith.constant 0 : i32
    return %c0_i32, %c0_i32_0 : i32, i32
  }
  func.func @transform_6(%arg0: i32) -> (i32, i32) {
    %c0_i32 = arith.constant 0 : i32
    %c0_i32_0 = arith.constant 0 : i32
    %c0_i32_1 = arith.constant 0 : i32
    return %c0_i32, %c0_i32_0 : i32, i32
  }
  func.func @transform_7(%arg0: i32) -> (i32, i32) {
    %c0_i32 = arith.constant 0 : i32
    %c0_i32_0 = arith.constant 0 : i32
    return %arg0, %c0_i32 : i32, i32
  }
}

module attributes {stable_mosaic.version = 11 : i64} {
  func.func @_attn_block_kernel(%arg0: i32, %arg1: memref<1x8x128xf32, #tpu.memory_space<vmem>>, %arg2: memref<1x128xf32, #tpu.memory_space<vmem>>, %arg3: memref<1x128xf32, #tpu.memory_space<vmem>>, %arg4: memref<128x384xbf16, #tpu.memory_space<vmem>>, %arg5: memref<1x384xf32, #tpu.memory_space<vmem>>, %arg6: memref<128x128xbf16, #tpu.memory_space<vmem>>, %arg7: memref<1x128xf32, #tpu.memory_space<vmem>>, %arg8: memref<1x1x8xf32, #tpu.memory_space<vmem>>, %arg9: memref<1x8x128xf32, #tpu.memory_space<vmem>>) attributes {dimension_semantics = [#tpu.dimension_semantics<parallel>], iteration_bounds = array<i64: 2>, scalar_prefetch = 0 : i64, scratch_operands = 0 : i64, tpu.core_type = #tpu.core_type<tc>, window_params = [{transform_indices = @transform_0, window_bounds = array<i64: 1, 8, 128>}, {pipeline_mode = #tpu.pipeline_mode<synchronous>, transform_indices = @transform_1, window_bounds = array<i64: 1, 128>}, {pipeline_mode = #tpu.pipeline_mode<synchronous>, transform_indices = @transform_2, window_bounds = array<i64: 1, 128>}, {pipeline_mode = #tpu.pipeline_mode<synchronous>, transform_indices = @transform_3, window_bounds = array<i64: 128, 384>}, {pipeline_mode = #tpu.pipeline_mode<synchronous>, transform_indices = @transform_4, window_bounds = array<i64: 1, 384>}, {pipeline_mode = #tpu.pipeline_mode<synchronous>, transform_indices = @transform_5, window_bounds = array<i64: 128, 128>}, {pipeline_mode = #tpu.pipeline_mode<synchronous>, transform_indices = @transform_6, window_bounds = array<i64: 1, 128>}, {transform_indices = @transform_7, window_bounds = array<i64: 1, 1, 8>}, {transform_indices = @transform_8, window_bounds = array<i64: 1, 8, 128>}]} {
    %c0 = arith.constant 0 : index
    %c0_0 = arith.constant 0 : index
    %c0_1 = arith.constant 0 : index
    %0 = vector.load %arg1[%c0, %c0_0, %c0_1] : memref<1x8x128xf32, #tpu.memory_space<vmem>>, vector<1x8x128xf32>
    %1 = vector.shape_cast %0 : vector<1x8x128xf32> to vector<8x128xf32>
    %c0_2 = arith.constant 0 : index
    %c0_3 = arith.constant 0 : index
    %2 = vector.load %arg2[%c0_2, %c0_3] : memref<1x128xf32, #tpu.memory_space<vmem>>, vector<1x128xf32>
    %c0_4 = arith.constant 0 : index
    %c0_5 = arith.constant 0 : index
    %3 = vector.load %arg3[%c0_4, %c0_5] : memref<1x128xf32, #tpu.memory_space<vmem>>, vector<1x128xf32>
    %cst = arith.constant dense<0.000000e+00> : vector<8xf32>
    %4 = vector.multi_reduction <add>, %1, %cst [1] : vector<8x128xf32> to vector<8xf32>
    %5 = vector.shape_cast %4 : vector<8xf32> to vector<8x1xf32>
    %cst_6 = arith.constant 1.280000e+02 : f32
    %6 = vector.broadcast %cst_6 : f32 to vector<8x1xf32>
    %7 = arith.divf %5, %6 : vector<8x1xf32>
    %8 = vector.broadcast %7 : vector<8x1xf32> to vector<8x128xf32>
    %9 = arith.subf %1, %8 : vector<8x128xf32>
    %10 = arith.mulf %9, %9 : vector<8x128xf32>
    %cst_7 = arith.constant dense<0.000000e+00> : vector<8xf32>
    %11 = vector.multi_reduction <add>, %10, %cst_7 [1] : vector<8x128xf32> to vector<8xf32>
    %12 = vector.shape_cast %11 : vector<8xf32> to vector<8x1xf32>
    %cst_8 = arith.constant 1.280000e+02 : f32
    %13 = vector.broadcast %cst_8 : f32 to vector<8x1xf32>
    %14 = arith.divf %12, %13 : vector<8x1xf32>
    %15 = vector.broadcast %7 : vector<8x1xf32> to vector<8x128xf32>
    %16 = arith.subf %1, %15 : vector<8x128xf32>
    %cst_9 = arith.constant 9.99999974E-6 : f32
    %17 = vector.broadcast %cst_9 : f32 to vector<8x1xf32>
    %18 = arith.addf %14, %17 : vector<8x1xf32>
    %19 = math.rsqrt %18 : vector<8x1xf32>
    %20 = vector.broadcast %19 : vector<8x1xf32> to vector<8x128xf32>
    %21 = arith.mulf %16, %20 : vector<8x128xf32>
    %22 = vector.broadcast %2 : vector<1x128xf32> to vector<8x128xf32>
    %23 = arith.mulf %21, %22 : vector<8x128xf32>
    %24 = vector.broadcast %3 : vector<1x128xf32> to vector<8x128xf32>
    %25 = arith.addf %23, %24 : vector<8x128xf32>
    %26 = arith.truncf %25 : vector<8x128xf32> to vector<8x128xbf16>
    %c0_10 = arith.constant 0 : index
    %c0_11 = arith.constant 0 : index
    %27 = vector.load %arg4[%c0_10, %c0_11] : memref<128x384xbf16, #tpu.memory_space<vmem>>, vector<128x384xbf16>
    %cst_12 = arith.constant dense<0.000000e+00> : vector<8x384xf32>
    %28 = tpu.matmul %26, %27, %cst_12 {dimension_numbers = #tpu.dot_dimension_numbers<[1], [0], [0], [1], [0, 0, 1, 1], [], []>} : vector<8x128xbf16>, vector<128x384xbf16>, vector<8x384xf32> -> vector<8x384xf32>
    %c0_13 = arith.constant 0 : index
    %c0_14 = arith.constant 0 : index
    %29 = vector.load %arg5[%c0_13, %c0_14] : memref<1x384xf32, #tpu.memory_space<vmem>>, vector<1x384xf32>
    %30 = vector.broadcast %29 : vector<1x384xf32> to vector<8x384xf32>
    %31 = arith.addf %28, %30 : vector<8x384xf32>
    %c0_15 = arith.constant 0 : index
    %c0_16 = arith.constant 0 : index
    %c0_17 = arith.constant 0 : index
    %32 = vector.load %arg8[%c0_15, %c0_16, %c0_17] : memref<1x1x8xf32, #tpu.memory_space<vmem>>, vector<1x1x8xf32>
    %33 = vector.shape_cast %32 : vector<1x1x8xf32> to vector<1x8xf32>
    %34 = vector.extract_strided_slice %31 {offsets = [0, 0], sizes = [8, 32], strides = [1, 1]} : vector<8x384xf32> to vector<8x32xf32>
    %35 = arith.truncf %34 : vector<8x32xf32> to vector<8x32xbf16>
    %36 = vector.extract_strided_slice %31 {offsets = [0, 128], sizes = [8, 32], strides = [1, 1]} : vector<8x384xf32> to vector<8x32xf32>
    %37 = arith.truncf %36 : vector<8x32xf32> to vector<8x32xbf16>
    %38 = vector.extract_strided_slice %31 {offsets = [0, 256], sizes = [8, 32], strides = [1, 1]} : vector<8x384xf32> to vector<8x32xf32>
    %39 = arith.truncf %38 : vector<8x32xf32> to vector<8x32xbf16>
    %cst_18 = arith.constant dense<0.000000e+00> : vector<8x8xf32>
    %40 = tpu.matmul %35, %37, %cst_18 {dimension_numbers = #tpu.dot_dimension_numbers<[1], [1], [0], [0], [0, 0, 1, 0], [], []>} : vector<8x32xbf16>, vector<8x32xbf16>, vector<8x8xf32> -> vector<8x8xf32>
    %cst_19 = arith.constant 0.176776692 : f32
    %41 = vector.broadcast %cst_19 : f32 to vector<8x8xf32>
    %42 = arith.mulf %40, %41 : vector<8x8xf32>
    %43 = vector.broadcast %33 : vector<1x8xf32> to vector<8x8xf32>
    %44 = arith.addf %42, %43 : vector<8x8xf32>
    %cst_20 = arith.constant dense<0xFF800000> : vector<8xf32>
    %45 = vector.multi_reduction <maximumf>, %44, %cst_20 [1] : vector<8x8xf32> to vector<8xf32>
    %46 = vector.shape_cast %45 : vector<8xf32> to vector<8x1xf32>
    %47 = vector.broadcast %46 : vector<8x1xf32> to vector<8x8xf32>
    %48 = arith.subf %44, %47 : vector<8x8xf32>
    %49 = math.exp %48 : vector<8x8xf32>
    %cst_21 = arith.constant dense<0.000000e+00> : vector<8xf32>
    %50 = vector.multi_reduction <add>, %49, %cst_21 [1] : vector<8x8xf32> to vector<8xf32>
    %51 = vector.shape_cast %50 : vector<8xf32> to vector<8x1xf32>
    %52 = tpu.reciprocal %51 {approx = true} : vector<8x1xf32> -> vector<8x1xf32>
    %53 = vector.broadcast %52 : vector<8x1xf32> to vector<8x8xf32>
    %54 = arith.mulf %49, %53 : vector<8x8xf32>
    %55 = arith.truncf %54 : vector<8x8xf32> to vector<8x8xbf16>
    %cst_22 = arith.constant dense<0.000000e+00> : vector<8x32xf32>
    %56 = tpu.matmul %55, %39, %cst_22 {dimension_numbers = #tpu.dot_dimension_numbers<[1], [0], [0], [1], [0, 0, 1, 1], [], []>} : vector<8x8xbf16>, vector<8x32xbf16>, vector<8x32xf32> -> vector<8x32xf32>
    %57 = vector.extract_strided_slice %31 {offsets = [0, 32], sizes = [8, 32], strides = [1, 1]} : vector<8x384xf32> to vector<8x32xf32>
    %58 = arith.truncf %57 : vector<8x32xf32> to vector<8x32xbf16>
    %59 = vector.extract_strided_slice %31 {offsets = [0, 160], sizes = [8, 32], strides = [1, 1]} : vector<8x384xf32> to vector<8x32xf32>
    %60 = arith.truncf %59 : vector<8x32xf32> to vector<8x32xbf16>
    %61 = vector.extract_strided_slice %31 {offsets = [0, 288], sizes = [8, 32], strides = [1, 1]} : vector<8x384xf32> to vector<8x32xf32>
    %62 = arith.truncf %61 : vector<8x32xf32> to vector<8x32xbf16>
    %cst_23 = arith.constant dense<0.000000e+00> : vector<8x8xf32>
    %63 = tpu.matmul %58, %60, %cst_23 {dimension_numbers = #tpu.dot_dimension_numbers<[1], [1], [0], [0], [0, 0, 1, 0], [], []>} : vector<8x32xbf16>, vector<8x32xbf16>, vector<8x8xf32> -> vector<8x8xf32>
    %cst_24 = arith.constant 0.176776692 : f32
    %64 = vector.broadcast %cst_24 : f32 to vector<8x8xf32>
    %65 = arith.mulf %63, %64 : vector<8x8xf32>
    %66 = vector.broadcast %33 : vector<1x8xf32> to vector<8x8xf32>
    %67 = arith.addf %65, %66 : vector<8x8xf32>
    %cst_25 = arith.constant dense<0xFF800000> : vector<8xf32>
    %68 = vector.multi_reduction <maximumf>, %67, %cst_25 [1] : vector<8x8xf32> to vector<8xf32>
    %69 = vector.shape_cast %68 : vector<8xf32> to vector<8x1xf32>
    %70 = vector.broadcast %69 : vector<8x1xf32> to vector<8x8xf32>
    %71 = arith.subf %67, %70 : vector<8x8xf32>
    %72 = math.exp %71 : vector<8x8xf32>
    %cst_26 = arith.constant dense<0.000000e+00> : vector<8xf32>
    %73 = vector.multi_reduction <add>, %72, %cst_26 [1] : vector<8x8xf32> to vector<8xf32>
    %74 = vector.shape_cast %73 : vector<8xf32> to vector<8x1xf32>
    %75 = tpu.reciprocal %74 {approx = true} : vector<8x1xf32> -> vector<8x1xf32>
    %76 = vector.broadcast %75 : vector<8x1xf32> to vector<8x8xf32>
    %77 = arith.mulf %72, %76 : vector<8x8xf32>
    %78 = arith.truncf %77 : vector<8x8xf32> to vector<8x8xbf16>
    %cst_27 = arith.constant dense<0.000000e+00> : vector<8x32xf32>
    %79 = tpu.matmul %78, %62, %cst_27 {dimension_numbers = #tpu.dot_dimension_numbers<[1], [0], [0], [1], [0, 0, 1, 1], [], []>} : vector<8x8xbf16>, vector<8x32xbf16>, vector<8x32xf32> -> vector<8x32xf32>
    %80 = vector.extract_strided_slice %31 {offsets = [0, 64], sizes = [8, 32], strides = [1, 1]} : vector<8x384xf32> to vector<8x32xf32>
    %81 = arith.truncf %80 : vector<8x32xf32> to vector<8x32xbf16>
    %82 = vector.extract_strided_slice %31 {offsets = [0, 192], sizes = [8, 32], strides = [1, 1]} : vector<8x384xf32> to vector<8x32xf32>
    %83 = arith.truncf %82 : vector<8x32xf32> to vector<8x32xbf16>
    %84 = vector.extract_strided_slice %31 {offsets = [0, 320], sizes = [8, 32], strides = [1, 1]} : vector<8x384xf32> to vector<8x32xf32>
    %85 = arith.truncf %84 : vector<8x32xf32> to vector<8x32xbf16>
    %cst_28 = arith.constant dense<0.000000e+00> : vector<8x8xf32>
    %86 = tpu.matmul %81, %83, %cst_28 {dimension_numbers = #tpu.dot_dimension_numbers<[1], [1], [0], [0], [0, 0, 1, 0], [], []>} : vector<8x32xbf16>, vector<8x32xbf16>, vector<8x8xf32> -> vector<8x8xf32>
    %cst_29 = arith.constant 0.176776692 : f32
    %87 = vector.broadcast %cst_29 : f32 to vector<8x8xf32>
    %88 = arith.mulf %86, %87 : vector<8x8xf32>
    %89 = vector.broadcast %33 : vector<1x8xf32> to vector<8x8xf32>
    %90 = arith.addf %88, %89 : vector<8x8xf32>
    %cst_30 = arith.constant dense<0xFF800000> : vector<8xf32>
    %91 = vector.multi_reduction <maximumf>, %90, %cst_30 [1] : vector<8x8xf32> to vector<8xf32>
    %92 = vector.shape_cast %91 : vector<8xf32> to vector<8x1xf32>
    %93 = vector.broadcast %92 : vector<8x1xf32> to vector<8x8xf32>
    %94 = arith.subf %90, %93 : vector<8x8xf32>
    %95 = math.exp %94 : vector<8x8xf32>
    %cst_31 = arith.constant dense<0.000000e+00> : vector<8xf32>
    %96 = vector.multi_reduction <add>, %95, %cst_31 [1] : vector<8x8xf32> to vector<8xf32>
    %97 = vector.shape_cast %96 : vector<8xf32> to vector<8x1xf32>
    %98 = tpu.reciprocal %97 {approx = true} : vector<8x1xf32> -> vector<8x1xf32>
    %99 = vector.broadcast %98 : vector<8x1xf32> to vector<8x8xf32>
    %100 = arith.mulf %95, %99 : vector<8x8xf32>
    %101 = arith.truncf %100 : vector<8x8xf32> to vector<8x8xbf16>
    %cst_32 = arith.constant dense<0.000000e+00> : vector<8x32xf32>
    %102 = tpu.matmul %101, %85, %cst_32 {dimension_numbers = #tpu.dot_dimension_numbers<[1], [0], [0], [1], [0, 0, 1, 1], [], []>} : vector<8x8xbf16>, vector<8x32xbf16>, vector<8x32xf32> -> vector<8x32xf32>
    %103 = vector.extract_strided_slice %31 {offsets = [0, 96], sizes = [8, 32], strides = [1, 1]} : vector<8x384xf32> to vector<8x32xf32>
    %104 = arith.truncf %103 : vector<8x32xf32> to vector<8x32xbf16>
    %105 = vector.extract_strided_slice %31 {offsets = [0, 224], sizes = [8, 32], strides = [1, 1]} : vector<8x384xf32> to vector<8x32xf32>
    %106 = arith.truncf %105 : vector<8x32xf32> to vector<8x32xbf16>
    %107 = vector.extract_strided_slice %31 {offsets = [0, 352], sizes = [8, 32], strides = [1, 1]} : vector<8x384xf32> to vector<8x32xf32>
    %108 = arith.truncf %107 : vector<8x32xf32> to vector<8x32xbf16>
    %cst_33 = arith.constant dense<0.000000e+00> : vector<8x8xf32>
    %109 = tpu.matmul %104, %106, %cst_33 {dimension_numbers = #tpu.dot_dimension_numbers<[1], [1], [0], [0], [0, 0, 1, 0], [], []>} : vector<8x32xbf16>, vector<8x32xbf16>, vector<8x8xf32> -> vector<8x8xf32>
    %cst_34 = arith.constant 0.176776692 : f32
    %110 = vector.broadcast %cst_34 : f32 to vector<8x8xf32>
    %111 = arith.mulf %109, %110 : vector<8x8xf32>
    %112 = vector.broadcast %33 : vector<1x8xf32> to vector<8x8xf32>
    %113 = arith.addf %111, %112 : vector<8x8xf32>
    %cst_35 = arith.constant dense<0xFF800000> : vector<8xf32>
    %114 = vector.multi_reduction <maximumf>, %113, %cst_35 [1] : vector<8x8xf32> to vector<8xf32>
    %115 = vector.shape_cast %114 : vector<8xf32> to vector<8x1xf32>
    %116 = vector.broadcast %115 : vector<8x1xf32> to vector<8x8xf32>
    %117 = arith.subf %113, %116 : vector<8x8xf32>
    %118 = math.exp %117 : vector<8x8xf32>
    %cst_36 = arith.constant dense<0.000000e+00> : vector<8xf32>
    %119 = vector.multi_reduction <add>, %118, %cst_36 [1] : vector<8x8xf32> to vector<8xf32>
    %120 = vector.shape_cast %119 : vector<8xf32> to vector<8x1xf32>
    %121 = tpu.reciprocal %120 {approx = true} : vector<8x1xf32> -> vector<8x1xf32>
    %122 = vector.broadcast %121 : vector<8x1xf32> to vector<8x8xf32>
    %123 = arith.mulf %118, %122 : vector<8x8xf32>
    %124 = arith.truncf %123 : vector<8x8xf32> to vector<8x8xbf16>
    %cst_37 = arith.constant dense<0.000000e+00> : vector<8x32xf32>
    %125 = tpu.matmul %124, %108, %cst_37 {dimension_numbers = #tpu.dot_dimension_numbers<[1], [0], [0], [1], [0, 0, 1, 1], [], []>} : vector<8x8xbf16>, vector<8x32xbf16>, vector<8x32xf32> -> vector<8x32xf32>
    %126 = tpu.concatenate %56, %79, %102, %125 in 1 : vector<8x32xf32>, vector<8x32xf32>, vector<8x32xf32>, vector<8x32xf32> -> vector<8x128xf32>
    %127 = arith.truncf %126 : vector<8x128xf32> to vector<8x128xbf16>
    %c0_38 = arith.constant 0 : index
    %c0_39 = arith.constant 0 : index
    %128 = vector.load %arg6[%c0_38, %c0_39] : memref<128x128xbf16, #tpu.memory_space<vmem>>, vector<128x128xbf16>
    %cst_40 = arith.constant dense<0.000000e+00> : vector<8x128xf32>
    %129 = tpu.matmul %127, %128, %cst_40 {dimension_numbers = #tpu.dot_dimension_numbers<[1], [0], [0], [1], [0, 0, 1, 1], [], []>} : vector<8x128xbf16>, vector<128x128xbf16>, vector<8x128xf32> -> vector<8x128xf32>
    %c0_41 = arith.constant 0 : index
    %c0_42 = arith.constant 0 : index
    %130 = vector.load %arg7[%c0_41, %c0_42] : memref<1x128xf32, #tpu.memory_space<vmem>>, vector<1x128xf32>
    %131 = vector.broadcast %130 : vector<1x128xf32> to vector<8x128xf32>
    %132 = arith.addf %129, %131 : vector<8x128xf32>
    %133 = arith.addf %1, %132 : vector<8x128xf32>
    %c0_43 = arith.constant 0 : index
    %c0_44 = arith.constant 0 : index
    %c0_45 = arith.constant 0 : index
    %134 = vector.load %arg9[%c0_43, %c0_44, %c0_45] : memref<1x8x128xf32, #tpu.memory_space<vmem>>, vector<1x8x128xf32>
    %135 = vector.shape_cast %134 : vector<1x8x128xf32> to vector<8x128xf32>
    %136 = vector.shape_cast %133 : vector<8x128xf32> to vector<1x8x128xf32>
    tpu.vector_store %arg9[%c0_43, %c0_44, %c0_45], %136 {strides = array<i32>} : memref<1x8x128xf32, #tpu.memory_space<vmem>>, vector<1x8x128xf32>,
    return
  }
  func.func @transform_0(%arg0: i32) -> (i32, i32, i32) {
    %c0_i32 = arith.constant 0 : i32
    %c0_i32_0 = arith.constant 0 : i32
    %c0_i32_1 = arith.constant 0 : i32
    return %arg0, %c0_i32, %c0_i32_0 : i32, i32, i32
  }
  func.func @transform_1(%arg0: i32) -> (i32, i32) {
    %c0_i32 = arith.constant 0 : i32
    %c0_i32_0 = arith.constant 0 : i32
    %c0_i32_1 = arith.constant 0 : i32
    return %c0_i32, %c0_i32_0 : i32, i32
  }
  func.func @transform_2(%arg0: i32) -> (i32, i32) {
    %c0_i32 = arith.constant 0 : i32
    %c0_i32_0 = arith.constant 0 : i32
    %c0_i32_1 = arith.constant 0 : i32
    return %c0_i32, %c0_i32_0 : i32, i32
  }
  func.func @transform_3(%arg0: i32) -> (i32, i32) {
    %c0_i32 = arith.constant 0 : i32
    %c0_i32_0 = arith.constant 0 : i32
    %c0_i32_1 = arith.constant 0 : i32
    return %c0_i32, %c0_i32_0 : i32, i32
  }
  func.func @transform_4(%arg0: i32) -> (i32, i32) {
    %c0_i32 = arith.constant 0 : i32
    %c0_i32_0 = arith.constant 0 : i32
    %c0_i32_1 = arith.constant 0 : i32
    return %c0_i32, %c0_i32_0 : i32, i32
  }
  func.func @transform_5(%arg0: i32) -> (i32, i32) {
    %c0_i32 = arith.constant 0 : i32
    %c0_i32_0 = arith.constant 0 : i32
    %c0_i32_1 = arith.constant 0 : i32
    return %c0_i32, %c0_i32_0 : i32, i32
  }
  func.func @transform_6(%arg0: i32) -> (i32, i32) {
    %c0_i32 = arith.constant 0 : i32
    %c0_i32_0 = arith.constant 0 : i32
    %c0_i32_1 = arith.constant 0 : i32
    return %c0_i32, %c0_i32_0 : i32, i32
  }
  func.func @transform_7(%arg0: i32) -> (i32, i32, i32) {
    %c0_i32 = arith.constant 0 : i32
    %c0_i32_0 = arith.constant 0 : i32
    %c0_i32_1 = arith.constant 0 : i32
    return %arg0, %c0_i32, %c0_i32_0 : i32, i32, i32
  }
  func.func @transform_8(%arg0: i32) -> (i32, i32, i32) {
    %c0_i32 = arith.constant 0 : i32
    %c0_i32_0 = arith.constant 0 : i32
    %c0_i32_1 = arith.constant 0 : i32
    return %arg0, %c0_i32, %c0_i32_0 : i32, i32, i32
  }
}

</mosaic_0001>

<bundles_post_ra>
// kernel: fwd.5
= control target key start
LH: loop header
LB: loop body
LE: loop exit
PB: predicated region body
PF: predicated region fallthrough
CT: control target
= control target key end

     0   :  { %s416_s15 = smov 0   ;;  %s451_s0 = inlined_call_operand.vmem [shape: f32[2,8,64], index: 0, kind: input, shape index: {}]   ;;  %s452_s1 = inlined_call_operand.vmem [shape: bf16[64,128], index: 1, kind: input, shape index: {}]   ;;  %s453_s2 = inlined_call_operand.vmem [shape: f32[1,128], index: 2, kind: input, shape index: {}]   ;;  %s454_s3 = inlined_call_operand.vmem [shape: f32[8,128], index: 3, kind: input, shape index: {}]   ;;  %s455_s4 = inlined_call_operand.vmem [shape: f32[2,8,128], index: 4, kind: output, shape index: {}]  }
   0x1 LB: > { %s335_s16 = sadd.s32 4294967295, %s387_s15   ;;  %p339_p0 = scmp.ge.s32.totalorder %s387_s15, 1  ;;  %s387_s15 = sphi %s416_s15, %s14_s15  }
   0x2   : > { %p161_p1 = scmp.lt.s32.totalorder %s387_s15, 3 }
   0x4   : > { %p162_p2 = pnand %p339_p0, %p161_p1 }
   0x5   : > { %p185_p3 = scmp.lt.s32.totalorder (!%p162_p2), %s335_s16, 1 }
   0x6   : > { %165 = sbr.rel (%p162_p2) target bundleno = 227 (0xe3), region = 36 }
   0xb   : > { %v377_v0 = vld [vmem:[%s452_s1 + $0x18] sm:$0xff]   ;;  %v389_v1 = vmov 0.0   ;;  %v378_v2 = vld [vmem:[%s452_s1 + $0x10] sm:$0xff]   ;;  %vm390_vm0 = vmmov 0   ;;  %s457_s16 = smov (!%p185_p3, %s335_s16), 1  ;;  %v379_v3 = vld [vmem:[%s452_s1 + $0x8] sm:$0xff]  }
   0xc   : > { %355 = vmatprep.subr.bf16.mxu0 %v389_v1  ;;  %363 = vmatprep.mubr.msk.bf16.mxu0 %vm390_vm0, %v389_v1  ;;  %s340_s23 = sshll.u32 %s457_s16, 3  ;;  %v380_v4 = vld [vmem:[%s452_s1] sm:$0xff]   ;;  %vm235_vm1 = vcmask 523264  }
   0xd   : > { %356 = vmatpush3.bf16.msra.mxu0 %v377_v0  ;;  %s188_s26 = scalar_lea.vmem %s451_s0, %s340_s23  ;;  %v342_v7 = vld [vmem:[%s453_s2] ss:$0 sm:$0xff]  ;;  %s192_s9 = scalar_lea.vmem %s455_s4, %s340_s23 }
   0xe   : > { %357 = vmatprep.subr.bf16.mxu0 %v389_v1  ;;  %v194_v5 = vld [vmem:[%s188_s26] sm:$0xff] }
   0xf   : > { %v195_v6 = vpack.c.bf16 %v194_v5, %v194_v5  ;;  %v279_v9 = vld [vmem:[%s454_s3] sm:$0xff] }
  0x11   : > { %358 = vmatpush3.bf16.msra.mxu0 %v378_v2 }
  0x12   : > { %359 = vmatprep.subr.bf16.mxu0 %v389_v1 }
  0x15   : > { %360 = vmatpush3.bf16.msra.mxu0 %v379_v3 }
  0x16   : > { %361 = vmatprep.subr.bf16.mxu0 %v389_v1 }
  0x19   : > { %362 = vmatpush3.bf16.msra.mxu0 %v380_v4 }
  0x1c   : > { %364 = vmatmul.mubr.msk.bf16.vlgmr.msra.gmra.mxu0 %vm235_vm1, %v195_v6 }
  0xdc   : > { %v273_v8 = vpop.f32.mrf.mxu0 }
  0xdd   : > { %v274_v10 = vadd.f32 %v342_v7, %v273_v8 }
  0xde   : > { %v365_v11 = vpop.f32.mrf.mxu0 }
  0xdf   : > { %v280_v12 = vadd.f32 %v279_v9, %v274_v10 }
  0xe0   : > { %v276_v13 = vpop.f32.mrf.mxu0 }
  0xe1   : > { %281 = vst [vmem:[%s192_s9] sm:$0xff] %v280_v12 }
  0xe2   : > { %v366_v14 = vpop.f32.mrf.mxu0 }
  0xe3 PF: > { %s14_s15 = sadd.s32 1, %s387_s15  }
  0xe4   : > { %p11_p4 = scmp.ge.s32.totalorder %s14_s15, 4  }
  0xe6   :  { %13 = sbr.rel (!%p11_p4) target bundleno = 1 (0x1), region = 66 }

// kernel: fwd.7
= control target key start
LH: loop header
LB: loop body
LE: loop exit
PB: predicated region body
PF: predicated region fallthrough
CT: control target
= control target key end

     0   :  { %v514_v21 = vmov 0   ;;  %v89_v60 = vlaneseq  ;;  %s695_s0 = inlined_call_operand.vmem [shape: f32[16,128], index: 0, kind: input, shape index: {}]   ;;  %s696_s3 = inlined_call_operand.vmem [shape: bf16[128,256], index: 3, kind: input, shape index: {}]   ;;  %s697_s5 = inlined_call_operand.vmem [shape: bf16[256,128], index: 5, kind: input, shape index: {}]   ;;  %s698_s1 = inlined_call_operand.vmem [shape: f32[1,128], index: 1, kind: input, shape index: {}]   ;;  %s699_s2 = inlined_call_operand.vmem [shape: f32[1,128], index: 2, kind: input, shape index: {}]   ;;  %s700_s4 = inlined_call_operand.vmem [shape: f32[1,256], index: 4, kind: input, shape index: {}]   ;;  %s701_s6 = inlined_call_operand.vmem [shape: f32[1,128], index: 6, kind: input, shape index: {}]   ;;  %s702_s7 = inlined_call_operand.vmem [shape: f32[16,128], index: 7, kind: output, shape index: {}]  }
   0x1   :  { %v558_v0 = vld [vmem:[%s695_s0] sm:$0xff]  ;;  %v564_v1 = vld [vmem:[%s695_s0 + $0x8] sm:$0xff]  ;;  %v470_v2 = vld [vmem:[%s696_s3 + $0x74] ss:$8 sps:$4 sm:$0xff]   ;;  %211 = vmatprep.mubr.bf16.mxu0 %v514_v21 }
   0x2   :  { %31 = vadd.xlane.f32.xlu0 %v558_v0  ;;  %v472_v3 = vld [vmem:[%s696_s3 + $0x70] ss:$8 sps:$4 sm:$0xff]   ;;  %179 = vmatprep.subr.bf16.mxu0 %v470_v2  ;;  %v473_v12 = vld [vmem:[%s696_s3 + $0x64] ss:$8 sps:$4 sm:$0xff]   ;;  %v475_v13 = vld [vmem:[%s696_s3 + $0x60] ss:$8 sps:$4 sm:$0xff]  }
   0x3   :  { %180 = vmatpush1.bf16.msra.mxu0 %v472_v3  ;;  %v476_v14 = vld [vmem:[%s696_s3 + $0x54] ss:$8 sps:$4 sm:$0xff]   ;;  %v478_v15 = vld [vmem:[%s696_s3 + $0x50] ss:$8 sps:$4 sm:$0xff]   ;;  %v479_v16 = vld [vmem:[%s696_s3 + $0x44] ss:$8 sps:$4 sm:$0xff]  }
   0x4   :  { %181 = vmatprep.subr.bf16.mxu0 %v473_v12  ;;  %v481_v17 = vld [vmem:[%s696_s3 + $0x40] ss:$8 sps:$4 sm:$0xff]   ;;  %v482_v18 = vld [vmem:[%s696_s3 + $0x34] ss:$8 sps:$4 sm:$0xff]   ;;  %v484_v19 = vld [vmem:[%s696_s3 + $0x30] ss:$8 sps:$4 sm:$0xff]  }
   0x5   :  { %v485_v20 = vld [vmem:[%s696_s3 + $0x24] ss:$8 sps:$4 sm:$0xff]   ;;  %v487_v22 = vld [vmem:[%s696_s3 + $0x20] ss:$8 sps:$4 sm:$0xff]   ;;  %v488_v23 = vld [vmem:[%s696_s3 + $0x14] ss:$8 sps:$4 sm:$0xff]  }
   0x6   :  { %33 = vadd.xlane.f32.xlu0 %v564_v1  ;;  %v490_v24 = vld [vmem:[%s696_s3 + $0x10] ss:$8 sps:$4 sm:$0xff]   ;;  %v491_v25 = vld [vmem:[%s696_s3 + $0x4] ss:$8 sps:$4 sm:$0xff]   ;;  %v493_v26 = vld [vmem:[%s696_s3] ss:$8 sps:$4 sm:$0xff]  }
   0x7   :  { %182 = vmatpush1.bf16.msra.mxu0 %v475_v13  ;;  %v494_v27 = vld [vmem:[%s697_s5 + $0x78] sm:$0xff]   ;;  %v496_v29 = vld [vmem:[%s697_s5 + $0x70] sm:$0xff]   ;;  %v498_v31 = vld [vmem:[%s697_s5 + $0x68] sm:$0xff]   ;;  %v90_v61 = vshrl.u32 %v89_v60, 7 }
   0x8   :  { %183 = vmatprep.subr.bf16.mxu0 %v476_v14  ;;  %v495_v28 = vld [vmem:[%s697_s5 + $0x38] sm:$0xff]   ;;  %447 = vmatprep.subr.bf16.mxu1 %v494_v27  ;;  %v497_v30 = vld [vmem:[%s697_s5 + $0x30] sm:$0xff]   ;;  %v499_v32 = vld [vmem:[%s697_s5 + $0x28] sm:$0xff]  }
   0x9   :  { %448 = vmatpush3.bf16.msra.mxu1 %v495_v28  ;;  %v500_v33 = vld [vmem:[%s697_s5 + $0x60] sm:$0xff]   ;;  %v502_v35 = vld [vmem:[%s697_s5 + $0x58] sm:$0xff]   ;;  %v504_v54 = vld [vmem:[%s697_s5 + $0x50] sm:$0xff]   ;;  %v95_v62 = vsub.s32 1, %v90_v61  ;;  %v91_v63 = vsub.s32 0, %v90_v61 }
   0xa   :  { %449 = vmatprep.subr.bf16.mxu1 %v496_v29  ;;  %v501_v34 = vld [vmem:[%s697_s5 + $0x20] sm:$0xff]   ;;  %v503_v36 = vld [vmem:[%s697_s5 + $0x18] sm:$0xff]   ;;  %v505_v55 = vld [vmem:[%s697_s5 + $0x10] sm:$0xff]  }
   0xb   :  { %184 = vmatpush1.bf16.msra.mxu0 %v478_v15  ;;  %v412_v45 = vld [vmem:[%s698_s1] ss:$0 sm:$0xff]  ;;  %v506_v56 = vld [vmem:[%s697_s5 + $0x48] sm:$0xff]  }
   0xc   :  { %185 = vmatprep.subr.bf16.mxu0 %v479_v16  ;;  %v413_v49 = vld [vmem:[%s699_s2] ss:$0 sm:$0xff]  ;;  %v507_v57 = vld [vmem:[%s697_s5 + $0x8] sm:$0xff]  }
   0xd   :  { %450 = vmatpush3.bf16.msra.mxu1 %v497_v30  ;;  %v508_v58 = vld [vmem:[%s697_s5 + $0x40] sm:$0xff]  }
   0xe   :  { %451 = vmatprep.subr.bf16.mxu1 %v498_v31  ;;  %v509_v59 = vld [vmem:[%s697_s5] sm:$0xff]  }
   0xf   :  { %186 = vmatpush1.bf16.msra.mxu0 %v481_v17  ;;  %v87_v2 = vld [vmem:[%s700_s4] sm:$0x3] }
  0x10   :  { %187 = vmatprep.subr.bf16.mxu0 %v482_v18 }
  0x11   :  { %452 = vmatpush3.bf16.msra.mxu1 %v499_v32 }
  0x12   :  { %453 = vmatprep.subr.bf16.mxu1 %v500_v33 }
  0x13   :  { %188 = vmatpush1.bf16.msra.mxu0 %v484_v19 }
  0x14   :  { %189 = vmatprep.subr.bf16.mxu0 %v485_v20  ;;  %v430_v20 = vld [vmem:[%s701_s6] ss:$0 sm:$0xff] }
  0x15   :  { %454 = vmatpush3.bf16.msra.mxu1 %v501_v34 }
  0x16   :  { %455 = vmatprep.subr.bf16.mxu1 %v502_v35 }
  0x17   :  { %190 = vmatpush1.bf16.msra.mxu0 %v487_v22 }
  0x18   :  { %191 = vmatprep.subr.bf16.mxu0 %v488_v23 }
  0x19   :  { %456 = vmatpush3.bf16.msra.mxu1 %v503_v36 }
  0x1a   :  { %457 = vmatprep.subr.bf16.mxu1 %v504_v54 }
  0x1b   :  { %192 = vmatpush1.bf16.msra.mxu0 %v490_v24 }
  0x1c   :  { %193 = vmatprep.subr.bf16.mxu0 %v491_v25 }
  0x1d   :  { %458 = vmatpush3.bf16.msra.mxu1 %v505_v55 }
  0x1e   :  { %459 = vmatprep.subr.bf16.mxu1 %v506_v56 }
  0x1f   :  { %194 = vmatpush1.bf16.msra.mxu0 %v493_v26 }
  0x21   :  { %460 = vmatpush3.bf16.msra.mxu1 %v507_v57 }
  0x22   :  { %461 = vmatprep.subr.bf16.mxu1 %v508_v58 }
  0x25   :  { %462 = vmatpush3.bf16.msra.mxu1 %v509_v59 }
  0x8b   :  { %v32_v4 = vpop.xlane.xlu0 %31 }
  0x8c   :  { %v36_v5 = vmul.f32 0.0078125, %v32_v4  ;;  %v96_v4 = vrot.slane %v87_v2, %v95_v62 }
  0x8e   :  { %v574_v6 = vsub.f32 %v558_v0, %v36_v5  ;;  %v92_v5 = vrot.slane %v87_v2, %v91_v63 }
  0x8f   :  { %v34_v7 = vpop.xlane.xlu0 %33 }
  0x90   :  { %v37_v8 = vmul.f32 0.0078125, %v34_v7  ;;  %v40_v9 = vmul.f32 %v574_v6, %v574_v6 }
  0x92   :  { %v579_v10 = vsub.f32 %v564_v1, %v37_v8  ;;  %42 = vadd.xlane.f32.xlu1 %v40_v9 }
  0x94   :  { %v41_v11 = vmul.f32 %v579_v10, %v579_v10 }
  0x96   :  { %44 = vadd.xlane.f32.xlu1 %v41_v11 }
 0x11b   :  { %v43_v37 = vpop.xlane.xlu1 %42 }
 0x11c   :  { %v46_v38 = vmul.f32 0.0078125, %v43_v37 }
 0x11e   :  { %v48_v39 = vadd.f32 1e-05, %v46_v38 }
 0x11f   :  { %v45_v40 = vpop.xlane.xlu1 %44 }
 0x120   :  { %510 = vrsqrt.f32 %v48_v39  ;;  %v47_v41 = vmul.f32 0.0078125, %v45_v40 }
 0x122   :  { %v49_v42 = vadd.f32 1e-05, %v47_v41 }
 0x124   :  { %512 = vrsqrt.f32 %v49_v42 }
 0x12d   :  { %v511_v43 = vpop.eup %510 }
 0x12e   :  { %v52_v44 = vmul.f32 %v511_v43, %v574_v6 }
 0x130   :  { %v60_v48 = vmul.f32 %v412_v45, %v52_v44 }
 0x131   :  { %v513_v46 = vpop.eup %512 }
 0x132   :  { %v53_v47 = vmul.f32 %v513_v46, %v579_v10  ;;  %v68_v51 = vadd.f32 %v413_v49, %v60_v48 }
 0x134   :  { %v61_v50 = vmul.f32 %v412_v45, %v53_v47 }
 0x136   :  { %v69_v52 = vadd.f32 %v413_v49, %v61_v50 }
 0x138   :  { %v70_v53 = vpack.c.bf16 %v69_v52, %v68_v51 }
 0x13a   :  { %212 = vmatmul.mubr.bf16.vlgmr.msra.gmra.mxu0 %v70_v53 }
 0x1fa   :  { %v213_v3 = vpop.f32.mrf.mxu0 }
 0x1fb   :  { %v214_v10 = vadd.f32 %v213_v3, %v92_v5 }
 0x1fc   :  { %v215_v6 = vpop.f32.mrf.mxu0 }
 0x1fd   :  { %v216_v8 = vadd.f32 %v215_v6, %v96_v4  ;;  %v222_v16 = vmax.f32 %v214_v10, 0.0 }
 0x1fe   :  { %v217_v7 = vpop.f32.mrf.mxu0 }
 0x1ff   :  { %v218_v9 = vadd.f32 %v217_v7, %v92_v5  ;;  %v223_v14 = vmax.f32 %v216_v8, 0.0 }
 0x200   :  { %v219_v11 = vpop.f32.mrf.mxu0 }
 0x201   :  { %v220_v12 = vadd.f32 %v219_v11, %v96_v4  ;;  %v224_v13 = vmax.f32 %v218_v9, 0.0 }
 0x203   :  { %v225_v15 = vmax.f32 %v220_v12, 0.0  ;;  %v226_v18 = vpack.c.bf16 %v224_v13, %v222_v16 }
 0x205   :  { %v227_v17 = vpack.c.bf16 %v225_v15, %v223_v14 }
 0x207   :  { %395 = vmatprep.mubr.bf16.mxu1 %v227_v17 }
 0x208   :  { %396 = vmatmul.mubr.bf16.vlgmr.msra.gmra.mxu1 %v226_v18 }
 0x2c8   :  { %v463_v19 = vpop.f32.mrf.mxu1 }
 0x2ca   :  { %v464_v21 = vpop.f32.mrf.mxu1 }
 0x2cb   :  { %v465_v22 = vadd.f32 %v464_v21, %v463_v19 }
 0x2cc   :  { %v466_v23 = vpop.f32.mrf.mxu1 }
 0x2cd   :  { %v398_v24 = vadd.f32 %v465_v22, %v430_v20 }
 0x2ce   :  { %v467_v25 = vpop.f32.mrf.mxu1 }
 0x2cf   :  { %v404_v26 = vadd.f32 %v398_v24, %v558_v0  ;;  %v468_v27 = vadd.f32 %v467_v25, %v466_v23 }
 0x2d1   :  { %406 = vst [vmem:[%s702_s7] sm:$0xff] %v404_v26  ;;  %v401_v28 = vadd.f32 %v468_v27, %v430_v20 }
 0x2d3   :  { %v405_v29 = vadd.f32 %v401_v28, %v564_v1 }
 0x2d5   :  { %407 = vst [vmem:[%s702_s7 + $0x8] sm:$0xff] %v405_v29 }

// kernel: fwd.6
= control target key start
LH: loop header
LB: loop body
LE: loop exit
PB: predicated region body
PF: predicated region fallthrough
CT: control target
= control target key end

     0   :  { %13 = vsyncpa [#allocation3], 0  ;;  %s1636_s27 = smov 0   ;;  %s1815_s0 = inlined_call_operand.vmem [shape: f32[2,8,128], index: 0, kind: input, shape index: {}]   ;;  %s1816_s1 = inlined_call_operand.vmem [shape: f32[1,128], index: 1, kind: input, shape index: {}]   ;;  %s1817_s2 = inlined_call_operand.vmem [shape: f32[1,128], index: 2, kind: input, shape index: {}]   ;;  %s1818_s3 = inlined_call_operand.hbm [shape: bf16[128,384], index: 3, kind: input, shape index: {}]   ;;  %s1819_s4 = inlined_call_operand.vmem [shape: f32[1,384], index: 4, kind: input, shape index: {}]   ;;  %s1820_s5 = inlined_call_operand.vmem [shape: bf16[128,128], index: 5, kind: input, shape index: {}]   ;;  %s1821_s6 = inlined_call_operand.vmem [shape: f32[1,128], index: 6, kind: input, shape index: {}]   ;;  %s1822_s7 = inlined_call_operand.vmem [shape: f32[2,1,8], index: 7, kind: input, shape index: {}]   ;;  %s1823_s8 = inlined_call_operand.vmem [shape: f32[2,8,128], index: 8, kind: output, shape index: {}]  }
   0x1 LB: > { %s1282_s28 = sadd.s32 4294967295, %s1580_s27   ;;  %p1284_p0 = scmp.ge.s32.totalorder %s1580_s27, 1  ;;  %s1580_s27 = sphi %s1636_s27, %s19_s27  }
   0x2   : > { %p228_p1 = scmp.lt.s32.totalorder %s1580_s27, 3  ;;  %s1582_s29 = smov [#allocation2]  }
   0x3   : > { %s246_s30 = sshll.u32 %s1582_s29, 4  ;;  %p1467_p3 = scmp.eq.s32.totalorder %s1282_s28, 0  ;;  %s247_s30 = int_to_ptr.vmem [resolvable:$true] %s246_s30 }
   0x4   : > { %p1644_p2 = pnand %p1284_p0, %p228_p1  ;;  %s1555_s10 = scalar_lea.vmem %s247_s30, 3072 }
   0x5   : > { %p1556_p7 = scmp.ne.s32.totalorder %s247_s30, %s1555_s10  ;;  %p1563_p10 = scmp.lt.s32.totalorder %s247_s30, %s247_s30 }
   0x6   : > { %p1463_p4 = pneg %p1644_p2  ;;  %p1564_p11 = scmp.lt.s32.totalorder %s1555_s10, %s1555_s10 }
   0x8   : > { %p1464_p5 = pnand %p1467_p3, %p1463_p4  ;;  %p1565_p12 = por %p1564_p11, %p1563_p10 }
   0xa   : > { %p1546_p6 = pneg %p1464_p5 }
   0xc   : > { %p1558_p8 = pnand %p1556_p7, %p1546_p6 }
   0xe   : > { %p1559_p9 = pneg %p1558_p8 }
  0x10   : > { %p1566_p13 = pnand %p1565_p12, %p1559_p9 }
  0x12   : > { %1569 = shalt.err (!%p1566_p13)
}
  0x13   : > { %s1583_s11 = smov 192   ;;  %s1584_s12 = smov 12  }
  0x14   : > { %1466 = dma.hbm_to_vmem [thread:$0]  (!%p1464_p5), %s1818_s3, 3072, %s247_s30, [#allocation3], %s1583_s11, %s1583_s11, %s1584_s12  }
  0x15   : > { %284 = sbr.rel (%p1644_p2) target bundleno = 2104 (0x838), region = 52 }
  0x1a   : > { %1575 = dma.done.wait (%p1467_p3), [#allocation3], 3072  }
  0x1b   : > { %1577 = vsyncadd (%p1467_p3), [#allocation3], 4294964224  ;;  %p319_p0 = scmp.lt.s32.totalorder %s1282_s28, 1  ;;  %v1486_v1 = vld [vmem:[#allocation2 + $0xac] ss:$12 sps:$4 sm:$0xff]   ;;  %v1585_v3 = vmov 0.0   ;;  %v395_v41 = vlaneseq }
  0x1c   : > { %v1488_v2 = vld [vmem:[#allocation2 + $0xa8] ss:$12 sps:$4 sm:$0xff]   ;;  %1371 = vmatprep.subr.bf16.mxu1 %v1585_v3  ;;  %v1489_v4 = vld [vmem:[#allocation2 + $0xb0] ss:$12 sps:$4 sm:$0xff]   ;;  %538 = vmatprep.subr.bf16.mxu0 %v1486_v1  ;;  %v1493_v7 = vld [vmem:[#allocation2 + $0x98] ss:$12 sps:$4 sm:$0xff]  }
  0x1d   : > { %s1826_s28 = smov (!%p319_p0, %s1282_s28), 1  ;;  %v1490_v5 = vld [vmem:[#allocation2 + $0x94] ss:$12 sps:$4 sm:$0xff]   ;;  %539 = vmatpush1.bf16.msra.mxu0 %v1488_v2  ;;  %1372 = vmatpush3.bf16.msra.mxu1 %v1489_v4  ;;  %v1492_v6 = vld [vmem:[#allocation2 + $0x90] ss:$12 sps:$4 sm:$0xff]   ;;  %v1586_v22 = vmov 0  }
  0x1e   : > { %s1289_s15 = sshll.u32 %s1826_s28, 3  ;;  %540 = vmatprep.subr.bf16.mxu0 %v1490_v5  ;;  %1373 = vmatprep.subr.bf16.mxu1 %v1585_v3  ;;  %v1494_v12 = vld [vmem:[#allocation2 + $0x7c] ss:$12 sps:$4 sm:$0xff]   ;;  %v1496_v13 = vld [vmem:[#allocation2 + $0x78] ss:$12 sps:$4 sm:$0xff]   ;;  %vm1587_vm0 = vmmov 0   ;;  %s325_s9 = scalar_lea.vmem %s1822_s7, %s1826_s28 }
  0x1f   : > { %s322_s18 = scalar_lea.vmem %s1815_s0, %s1289_s15  ;;  %v1497_v14 = vld [vmem:[#allocation2 + $0x80] ss:$12 sps:$4 sm:$0xff]   ;;  %v1498_v15 = vld [vmem:[#allocation2 + $0x64] ss:$12 sps:$4 sm:$0xff]   ;;  %v1501_v17 = vld [vmem:[#allocation2 + $0x68] ss:$12 sps:$4 sm:$0xff]   ;;  %570 = vmatprep.mubr.bf16.mxu0 %v1586_v22  ;;  %1387 = vmatprep.mubr.msk.bf16.mxu1 %vm1587_vm0, %v1585_v3  ;;  %s329_s12 = scalar_lea.vmem %s1823_s8, %s1289_s15 }
  0x20   : > { %v1666_v0 = vld [vmem:[%s322_s18] sm:$0xff]  ;;  %v1502_v18 = vld [vmem:[#allocation2 + $0x4c] ss:$12 sps:$4 sm:$0xff]   ;;  %v1504_v19 = vld [vmem:[#allocation2 + $0x48] ss:$12 sps:$4 sm:$0xff]   ;;  %v396_v42 = vshrl.u32 %v395_v41, 7 }
  0x21   : > { %334 = vadd.xlane.f32.xlu0 %v1666_v0  ;;  %541 = vmatpush1.bf16.msra.mxu0 %v1492_v6  ;;  %v1500_v16 = vld [vmem:[#allocation2 + $0x60] ss:$12 sps:$4 sm:$0xff]   ;;  %v1505_v20 = vld [vmem:[#allocation2 + $0x50] ss:$12 sps:$4 sm:$0xff]   ;;  %v1509_v24 = vld [vmem:[#allocation2 + $0x38] ss:$12 sps:$4 sm:$0xff]  }
  0x22   : > { %1374 = vmatpush3.bf16.msra.mxu1 %v1493_v7  ;;  %542 = vmatprep.subr.bf16.mxu0 %v1494_v12  ;;  %v1506_v21 = vld [vmem:[#allocation2 + $0x34] ss:$12 sps:$4 sm:$0xff]   ;;  %v1508_v23 = vld [vmem:[#allocation2 + $0x30] ss:$12 sps:$4 sm:$0xff]   ;;  %v1512_v26 = vld [vmem:[#allocation2 + $0x18] ss:$12 sps:$4 sm:$0xff]  }
  0x23   : > { %1375 = vmatprep.subr.bf16.mxu1 %v1585_v3  ;;  %v1510_v25 = vld [vmem:[#allocation2 + $0x1c] ss:$12 sps:$4 sm:$0xff]   ;;  %v1513_v27 = vld [vmem:[#allocation2 + $0x20] ss:$12 sps:$4 sm:$0xff]   ;;  %v1514_v28 = vld [vmem:[#allocation2 + $0x4] ss:$12 sps:$4 sm:$0xff]  }
  0x24   : > { %v1516_v29 = vld [vmem:[#allocation2] ss:$12 sps:$4 sm:$0xff]   ;;  %v1517_v30 = vld [vmem:[#allocation2 + $0x8] ss:$12 sps:$4 sm:$0xff]   ;;  %v401_v43 = vsub.s32 1, %v396_v42  ;;  %v405_v45 = vsub.s32 2, %v396_v42 }
  0x25   : > { %543 = vmatpush1.bf16.msra.mxu0 %v1496_v13  ;;  %v1291_v35 = vld [vmem:[%s1816_s1] ss:$0 sm:$0xff]  ;;  %v397_v49 = vsub.s32 0, %v396_v42  ;;  %vm623_vm1 = vcmask 261120   ;;  %s1588_s25 = smov 96   ;;  %s1589_s26 = smov 32  }
  0x26   : > { %1376 = vmatpush3.bf16.msra.mxu1 %v1497_v14  ;;  %544 = vmatprep.subr.bf16.mxu0 %v1498_v15  ;;  %v1292_v37 = vld [vmem:[%s1817_s2] ss:$0 sm:$0xff]  ;;  %vm694_vm2 = vcmask 1043456   ;;  %vm678_vm3 = vcmask 64512   ;;  %s1590_s10 = smov 64   ;;  %vm1090_vm4 = vcmask 523264  }
  0x27   : > { %1377 = vmatprep.subr.bf16.mxu1 %v1585_v3  ;;  %v393_v44 = vld [vmem:[%s1819_s4] sm:$0x7]  ;;  %vm1092_vm5 = vcmask 785408  }
  0x28   : > { %v402_v46 = vrot.slane %v393_v44, %v401_v43  ;;  %v406_v52 = vrot.slane %v393_v44, %v405_v45  ;;  %v398_v56 = vrot.slane %v393_v44, %v397_v49  ;;  %v1711_v5 = vld [vmem:[%s325_s9] ss:$0 sm:$0xff] }
  0x29   : > { %545 = vmatpush1.bf16.msra.mxu0 %v1500_v16 }
  0x2a   : > { %1378 = vmatpush3.bf16.msra.mxu1 %v1501_v17  ;;  %546 = vmatprep.subr.bf16.mxu0 %v1502_v18 }
  0x2b   : > { %1379 = vmatprep.subr.bf16.mxu1 %v1585_v3 }
  0x2d   : > { %547 = vmatpush1.bf16.msra.mxu0 %v1504_v19 }
  0x2e   : > { %1380 = vmatpush3.bf16.msra.mxu1 %v1505_v20  ;;  %548 = vmatprep.subr.bf16.mxu0 %v1506_v21 }
  0x2f   : > { %1381 = vmatprep.subr.bf16.mxu1 %v1585_v3 }
  0x31   : > { %549 = vmatpush1.bf16.msra.mxu0 %v1508_v23 }
  0x32   : > { %1382 = vmatpush3.bf16.msra.mxu1 %v1509_v24  ;;  %550 = vmatprep.subr.bf16.mxu0 %v1510_v25 }
  0x33   : > { %1383 = vmatprep.subr.bf16.mxu1 %v1585_v3 }
  0x35   : > { %551 = vmatpush1.bf16.msra.mxu0 %v1512_v26 }
  0x36   : > { %1384 = vmatpush3.bf16.msra.mxu1 %v1513_v27  ;;  %552 = vmatprep.subr.bf16.mxu0 %v1514_v28 }
  0x37   : > { %1385 = vmatprep.subr.bf16.mxu1 %v1585_v3 }
  0x39   : > { %553 = vmatpush1.bf16.msra.mxu0 %v1516_v29 }
  0x3a   : > { %1386 = vmatpush3.bf16.msra.mxu1 %v1517_v30  ;;  %1415 = vmatprep.subr.bf16.mxu0 %v1585_v3 }
  0x3b   : > { %1391 = vmatprep.subr.bf16.mxu1 %v1585_v3 }
  0xaa   : > { %v335_v8 = vpop.xlane.xlu0 %334 }
  0xab   : > { %v337_v9 = vmul.f32 0.0078125, %v335_v8 }
  0xad   : > { %v338_v10 = vsub.f32 %v1666_v0, %v337_v9 }
  0xaf   : > { %v339_v11 = vmul.f32 %v338_v10, %v338_v10 }
  0xb1   : > { %340 = vadd.xlane.f32.xlu0 %v339_v11 }
 0x13a   : > { %v341_v31 = vpop.xlane.xlu0 %340 }
 0x13b   : > { %v342_v32 = vmul.f32 0.0078125, %v341_v31 }
 0x13d   : > { %v343_v33 = vadd.f32 1e-05, %v342_v32 }
 0x13f   : > { %1526 = vrsqrt.f32 %v343_v33 }
 0x14c   : > { %v1527_v34 = vpop.eup %1526 }
 0x14d   : > { %v345_v36 = vmul.f32 %v1527_v34, %v338_v10 }
 0x14f   : > { %v352_v38 = vmul.f32 %v1291_v35, %v345_v36 }
 0x151   : > { %v359_v39 = vadd.f32 %v1292_v37, %v352_v38 }
 0x153   : > { %v360_v40 = vpack.c.bf16 %v359_v39, %v359_v39 }
 0x155   : > { %571 = vmatmul.mubr.bf16.vlgmr.msra.gmra.mxu0 %v360_v40  ;;  %1388 = vmatmul.mubr.bf16.vlgmr.msra.gmra.mxu1 %v360_v40 }
 0x156   : > { %1393 = vmatprep.mubr.msk.bf16.mxu1 %vm1587_vm0, %v1585_v3  ;;  %1417 = vmatprep.mubr.msk.bf16.mxu0 %vm1587_vm0, %v1585_v3 }
 0x215   : > { %v572_v47 = vpop.f32.mrf.mxu0  ;;  %v613_v48 = vpop.f32.mrf.mxu1 }
 0x216   : > { %v614_v60 = vadd.f32 %v613_v48, %v406_v52  ;;  %v573_v62 = vadd.f32 %v572_v47, %v398_v56 }
 0x217   : > { %v574_v50 = vpop.f32.mrf.mxu0  ;;  %v1389_v51 = vpop.f32.mrf.mxu1 }
 0x218   : > { %v575_v53 = vadd.f32 %v574_v50, %v402_v46  ;;  %v1698_v63 = vpack.c.bf16 %v614_v60, %v614_v60  ;;  %v620_v1 = vpack.c.bf16 %v573_v62, %v573_v62 }
 0x219   : > { %v576_v54 = vpop.f32.mrf.mxu0  ;;  %v616_v55 = vpop.f32.mrf.mxu1 }
 0x21a   : > { %v621_v57 = vpack.c.bf16 %v575_v53, %v575_v53  ;;  %v696_v2 = vsel %vm694_vm2, %v1698_v63, 0 }
 0x21b   : > { %v577_v58 = vpop.f32.mrf.mxu0  ;;  %v1390_v59 = vpop.f32.mrf.mxu1 }
 0x21c   : > { %742 = vrot.lane.b32.xlu0 %v621_v57, %s1588_s25  ;;  %v628_v61 = vsel %vm623_vm1, %v621_v57, 0 }
 0x21d   : > { %1392 = vmatpush3.bf16.xpose.msra.mxu1 %v628_v61 }
 0x21e   : > { %1397 = vmatprep.subr.bf16.mxu1 %v1585_v3 }
 0x220   : > { %967 = vrot.lane.b32.xlu0 %v621_v57, %s1589_s26 }
 0x224   : > { %1394 = vmatmul.mubr.msk.bf16.vlgmr.msra.gmra.mxu1 %vm623_vm1, %v620_v1 }
 0x225   : > { %1398 = vmatpush3.bf16.msra.mxu1 %v696_v2  ;;  %1399 = vmatprep.mubr.msk.bf16.mxu1 %vm1587_vm0, %v1585_v3 }
 0x226   : > { %1403 = vmatprep.subr.bf16.mxu1 %v1585_v3 }
 0x28e   : > { %v743_v19 = vpop.permute.xlu0 %742 }
 0x28f   : > { %v748_v28 = vsel %vm623_vm1, %v743_v19, 0 }
 0x292   : > { %v968_v23 = vpop.permute.xlu0 %967 }
 0x293   : > { %v973_v26 = vsel %vm623_vm1, %v968_v23, 0 }
 0x2e4   : > { %v664_v4 = vpop.f32.mrf.mxu1 }
 0x2e5   : > { %v670_v6 = vmul.f32 0.17677669, %v664_v4 }
 0x2e6   : > { %v1395_v7 = vpop.f32.mrf.mxu1 }
 0x2e7   : > { %v677_v8 = vadd.f32 %v1711_v5, %v670_v6 }
 0x2e8   : > { %v667_v9 = vpop.f32.mrf.mxu1 }
 0x2e9   : > { %v679_v10 = vsel %vm678_vm3, %v677_v8, -inf }
 0x2ea   : > { %680 = vmax.xlane.f32.xlu1 %v679_v10  ;;  %v1396_v11 = vpop.f32.mrf.mxu1 }
 0x373   : > { %v681_v12 = vpop.xlane.xlu1 %680 }
 0x374   : > { %v682_v13 = vsub.f32 %v677_v8, %v681_v12 }
 0x376   : > { %v683_v14 = vmul.f32 1.442695, %v682_v13 }
 0x378   : > { %1528 = vpow2.f32 %v683_v14 }
 0x385   : > { %v1529_v15 = vpop.eup %1528 }
 0x386   : > { %v685_v16 = vsel %vm678_vm3, %v1529_v15, 0.0 }
 0x387   : > { %686 = vadd.xlane.f32.xlu1 %v685_v16 }
 0x398   : > { %739 = vrot.lane.b32.xlu1 %v620_v1, %s1588_s25 }
 0x39c   : > { %855 = vrot.lane.b32.xlu1 %v621_v57, %s1590_s10 }
 0x3a0   : > { %853 = vrot.lane.b32.xlu1 %v620_v1, %s1590_s10 }
 0x3a4   : > { %965 = vrot.lane.b32.xlu1 %v620_v1, %s1589_s26 }
 0x410   : > { %v687_v17 = vpop.xlane.xlu1 %686 }
 0x411   : > { %1530 = vrcp.f32 %v687_v17 }
 0x414   : > { %v740_v18 = vpop.permute.xlu1 %739 }
 0x418   : > { %v856_v20 = vpop.permute.xlu1 %855 }
 0x419   : > { %v861_v21 = vsel %vm623_vm1, %v856_v20, 0 }
 0x41a   : > { %1416 = vmatpush3.bf16.xpose.msra.mxu0 %v861_v21 }
 0x41b   : > { %1427 = vmatprep.subr.bf16.mxu0 %v1585_v3 }
 0x41c   : > { %v854_v25 = vpop.permute.xlu1 %853 }
 0x41e   : > { %v1531_v22 = vpop.eup %1530 }
 0x41f   : > { %v689_v24 = vmul.f32 %v1531_v22, %v1529_v15 }
 0x420   : > { %v966_v29 = vpop.permute.xlu1 %965 }
 0x421   : > { %1418 = vmatmul.mubr.msk.bf16.vlgmr.msra.gmra.mxu0 %vm623_vm1, %v854_v25  ;;  %v690_v27 = vpack.c.bf16 %v689_v24, %v689_v24 }
 0x422   : > { %1428 = vmatpush3.bf16.xpose.msra.mxu0 %v973_v26  ;;  %1429 = vmatprep.mubr.msk.bf16.mxu0 %vm1587_vm0, %v1585_v3  ;;  %v1518_v26 = vld [vmem:[%s1820_s5 + $0x38] sm:$0xff]  }
 0x423   : > { %1400 = vmatmul.mubr.msk.bf16.vlgmr.msra.gmra.mxu1 %vm678_vm3, %v690_v27  ;;  %1439 = vmatprep.subr.bf16.mxu0 %v1585_v3  ;;  %v1519_v27 = vld [vmem:[%s1820_s5 + $0x30] sm:$0xff]  }
 0x424   : > { %1404 = vmatpush3.bf16.xpose.msra.mxu1 %v748_v28  ;;  %1405 = vmatprep.mubr.msk.bf16.mxu1 %vm1587_vm0, %v1585_v3  ;;  %v1520_v28 = vld [vmem:[%s1820_s5 + $0x28] sm:$0xff]  }
 0x425   : > { %1409 = vmatprep.subr.bf16.mxu1 %v1585_v3 }
 0x429   : > { %1430 = vmatmul.mubr.msk.bf16.vlgmr.msra.gmra.mxu0 %vm623_vm1, %v966_v29  ;;  %v1521_v29 = vld [vmem:[%s1820_s5 + $0x20] sm:$0xff]  }
 0x42a   : > { %1455 = vmatprep.mubr.msk.bf16.mxu0 %vm1587_vm0, %v1585_v3  ;;  %1440 = vmatpush3.bf16.msra.mxu0 %v1518_v26 }
 0x42b   : > { %1406 = vmatmul.mubr.msk.bf16.vlgmr.msra.gmra.mxu1 %vm623_vm1, %v740_v18  ;;  %1441 = vmatprep.subr.bf16.mxu0 %v1585_v3 }
 0x42c   : > { %1411 = vmatprep.mubr.msk.bf16.mxu1 %vm1587_vm0, %v1585_v3 }
 0x42e   : > { %1442 = vmatpush3.bf16.msra.mxu0 %v1519_v27 }
 0x42f   : > { %1443 = vmatprep.subr.bf16.mxu0 %v1585_v3 }
 0x432   : > { %1444 = vmatpush3.bf16.msra.mxu0 %v1520_v28 }
 0x433   : > { %1445 = vmatprep.subr.bf16.mxu0 %v1585_v3 }
 0x436   : > { %1446 = vmatpush3.bf16.msra.mxu0 %v1521_v29 }
 0x437   : > { %1447 = vmatprep.subr.bf16.mxu0 %v1585_v3 }
 0x4e1   : > { %v897_v30 = vpop.f32.mrf.mxu0 }
 0x4e2   : > { %v903_v31 = vmul.f32 0.17677669, %v897_v30  ;;  %v1522_v30 = vld [vmem:[%s1820_s5 + $0x18] sm:$0xff]  }
 0x4e3   : > { %v1738_v32 = vpop.f32.mrf.mxu1  ;;  %v1419_v33 = vpop.f32.mrf.mxu0  ;;  %1448 = vmatpush3.bf16.msra.mxu0 %v1522_v30 }
 0x4e4   : > { %v904_v34 = vadd.f32 %v1711_v5, %v903_v31  ;;  %1449 = vmatprep.subr.bf16.mxu0 %v1585_v3  ;;  %v1523_v31 = vld [vmem:[%s1820_s5 + $0x10] sm:$0xff]   ;;  %v1524_v33 = vld [vmem:[%s1820_s5 + $0x8] sm:$0xff]  }
 0x4e5   : > { %v1401_v35 = vpop.f32.mrf.mxu1  ;;  %v900_v36 = vpop.f32.mrf.mxu0 }
 0x4e6   : > { %v905_v37 = vsel %vm678_vm3, %v904_v34, -inf  ;;  %v1525_v36 = vld [vmem:[%s1820_s5] sm:$0xff]  }
 0x4e7   : > { %906 = vmax.xlane.f32.xlu1 %v905_v37  ;;  %v735_v38 = vpop.f32.mrf.mxu1  ;;  %v1420_v39 = vpop.f32.mrf.mxu0  ;;  %1450 = vmatpush3.bf16.msra.mxu0 %v1523_v31 }
 0x4e8   : > { %1451 = vmatprep.subr.bf16.mxu0 %v1585_v3 }
 0x4e9   : > { %v1402_v40 = vpop.f32.mrf.mxu1  ;;  %v1009_v41 = vpop.f32.mrf.mxu0 }
 0x4ea   : > { %v1015_v44 = vmul.f32 0.17677669, %v1009_v41 }
 0x4eb   : > { %v784_v42 = vpop.f32.mrf.mxu1  ;;  %v1431_v43 = vpop.f32.mrf.mxu0  ;;  %1452 = vmatpush3.bf16.msra.mxu0 %v1524_v33 }
 0x4ec   : > { %v790_v45 = vmul.f32 0.17677669, %v784_v42  ;;  %v1016_v52 = vadd.f32 %v1711_v5, %v1015_v44  ;;  %1453 = vmatprep.subr.bf16.mxu0 %v1585_v3 }
 0x4ed   : > { %v1407_v46 = vpop.f32.mrf.mxu1  ;;  %v1012_v47 = vpop.f32.mrf.mxu0 }
 0x4ee   : > { %v791_v48 = vadd.f32 %v1711_v5, %v790_v45  ;;  %v1017_v54 = vsel %vm678_vm3, %v1016_v52, -inf }
 0x4ef   : > { %v787_v49 = vpop.f32.mrf.mxu1  ;;  %v1432_v50 = vpop.f32.mrf.mxu0  ;;  %1454 = vmatpush3.bf16.msra.mxu0 %v1525_v36 }
 0x4f0   : > { %v792_v51 = vsel %vm678_vm3, %v791_v48, -inf }
 0x4f1   : > { %793 = vmax.xlane.f32.xlu0 %v792_v51  ;;  %v1408_v53 = vpop.f32.mrf.mxu1 }
 0x4f2   : > { %v1326_v53 = vld [vmem:[%s1821_s6] ss:$0 sm:$0xff] }
 0x4f5   : > { %1018 = vmax.xlane.f32.xlu0 %v1017_v54 }
 0x570   : > { %v907_v55 = vpop.xlane.xlu1 %906 }
 0x571   : > { %v908_v56 = vsub.f32 %v904_v34, %v907_v55 }
 0x573   : > { %v909_v57 = vmul.f32 1.442695, %v908_v56 }
 0x575   : > { %1532 = vpow2.f32 %v909_v57 }
 0x57a   : > { %v794_v58 = vpop.xlane.xlu0 %793 }
 0x57b   : > { %v795_v59 = vsub.f32 %v791_v48, %v794_v58 }
 0x57d   : > { %v796_v60 = vmul.f32 1.442695, %v795_v59 }
 0x57e   : > { %v1019_v61 = vpop.xlane.xlu0 %1018 }
 0x57f   : > { %1534 = vpow2.f32 %v796_v60  ;;  %v1020_v62 = vsub.f32 %v1016_v52, %v1019_v61 }
 0x581   : > { %v1021_v1 = vmul.f32 1.442695, %v1020_v62 }
 0x582   : > { %v1533_v2 = vpop.eup %1532 }
 0x583   : > { %1536 = vpow2.f32 %v1021_v1  ;;  %v911_v4 = vsel %vm678_vm3, %v1533_v2, 0.0 }
 0x584   : > { %912 = vadd.xlane.f32.xlu0 %v911_v4 }
 0x58c   : > { %v1535_v5 = vpop.eup %1534 }
 0x58d   : > { %v798_v6 = vsel %vm678_vm3, %v1535_v5, 0.0 }
 0x58e   : > { %799 = vadd.xlane.f32.xlu0 %v798_v6 }
 0x590   : > { %v1537_v7 = vpop.eup %1536 }
 0x591   : > { %v1023_v8 = vsel %vm678_vm3, %v1537_v7, 0.0 }
 0x592   : > { %1024 = vadd.xlane.f32.xlu1 %v1023_v8 }
 0x5a3   : > { %917 = vrot.lane.b32.xlu1 %v1698_v63, %s1590_s10 }
 0x5a4   : > { %805 = vrot.lane.b32.xlu0 %v1698_v63, %s1588_s25 }
 0x5a7   : > { %1029 = vrot.lane.b32.xlu1 %v1698_v63, %s1589_s26 }
 0x60d   : > { %v913_v9 = vpop.xlane.xlu0 %912 }
 0x617   : > { %v800_v10 = vpop.xlane.xlu0 %799 }
 0x618   : > { %1538 = vrcp.f32 %v800_v10 }
 0x619   : > { %1540 = vrcp.f32 %v913_v9 }
 0x61b   : > { %v806_v11 = vpop.permute.xlu0 %805  ;;  %v1025_v13 = vpop.xlane.xlu1 %1024 }
 0x61c   : > { %v811_v12 = vsel %vm694_vm2, %v806_v11, 0  ;;  %1542 = vrcp.f32 %v1025_v13 }
 0x61d   : > { %1410 = vmatpush3.bf16.msra.mxu1 %v811_v12 }
 0x61e   : > { %1421 = vmatprep.subr.bf16.mxu1 %v1585_v3 }
 0x61f   : > { %v918_v16 = vpop.permute.xlu1 %917 }
 0x620   : > { %v923_v19 = vsel %vm694_vm2, %v918_v16, 0 }
 0x623   : > { %v1030_v20 = vpop.permute.xlu1 %1029 }
 0x624   : > { %v1035_v23 = vsel %vm694_vm2, %v1030_v20, 0 }
 0x625   : > { %v1539_v14 = vpop.eup %1538 }
 0x626   : > { %v802_v15 = vmul.f32 %v1539_v14, %v1535_v5  ;;  %v1541_v18 = vpop.eup %1540 }
 0x627   : > { %v915_v63 = vmul.f32 %v1541_v18, %v1533_v2 }
 0x628   : > { %v803_v17 = vpack.c.bf16 %v802_v15, %v802_v15 }
 0x629   : > { %v916_v21 = vpack.c.bf16 %v915_v63, %v915_v63  ;;  %v1543_v22 = vpop.eup %1542 }
 0x62a   : > { %1412 = vmatmul.mubr.msk.bf16.vlgmr.msra.gmra.mxu1 %vm678_vm3, %v803_v17  ;;  %v1027_v24 = vmul.f32 %v1543_v22, %v1537_v7 }
 0x62b   : > { %1422 = vmatpush3.bf16.msra.mxu1 %v923_v19  ;;  %1423 = vmatprep.mubr.msk.bf16.mxu1 %vm1587_vm0, %v1585_v3 }
 0x62c   : > { %1433 = vmatprep.subr.bf16.mxu1 %v1585_v3  ;;  %v1028_v25 = vpack.c.bf16 %v1027_v24, %v1027_v24 }
 0x632   : > { %1424 = vmatmul.mubr.msk.bf16.vlgmr.msra.gmra.mxu1 %vm678_vm3, %v916_v21 }
 0x633   : > { %1434 = vmatpush3.bf16.msra.mxu1 %v1035_v23  ;;  %1435 = vmatprep.mubr.msk.bf16.mxu1 %vm1587_vm0, %v1585_v3 }
 0x63a   : > { %1436 = vmatmul.mubr.msk.bf16.vlgmr.msra.gmra.mxu1 %vm678_vm3, %v1028_v25 }
 0x6ea   : > { %v847_v34 = vpop.f32.mrf.mxu1 }
 0x6eb   : > { %1078 = vrot.lane.b32.xlu1 %v847_v34, %s1589_s26 }
 0x6ec   : > { %v1413_v35 = vpop.f32.mrf.mxu1 }
 0x6ee   : > { %v850_v37 = vpop.f32.mrf.mxu1 }
 0x6f0   : > { %v1414_v38 = vpop.f32.mrf.mxu1 }
 0x6f2   : > { %v959_v39 = vpop.f32.mrf.mxu1 }
 0x6f3   : > { %1082 = vrot.lane.b32.xlu0 %v959_v39, %s1590_s10 }
 0x6f4   : > { %v1425_v40 = vpop.f32.mrf.mxu1 }
 0x6f6   : > { %v962_v41 = vpop.f32.mrf.mxu1 }
 0x6f8   : > { %v1426_v42 = vpop.f32.mrf.mxu1 }
 0x6fa   : > { %v1071_v43 = vpop.f32.mrf.mxu1 }
 0x6fb   : > { %1086 = vrot.lane.b32.xlu1 %v1071_v43, %s1588_s25 }
 0x6fc   : > { %v1437_v44 = vpop.f32.mrf.mxu1 }
 0x6fe   : > { %v1074_v45 = vpop.f32.mrf.mxu1 }
 0x700   : > { %v1438_v3 = vpop.f32.mrf.mxu1 }
 0x75d   : > { %v1079_v46 = vpop.permute.xlu1 %1078 }
 0x75e   : > { %v1089_v48 = vsel %vm623_vm1, %v1738_v32, %v1079_v46 }
 0x765   : > { %v1083_v47 = vpop.permute.xlu0 %1082 }
 0x766   : > { %v1091_v49 = vsel %vm1090_vm4, %v1089_v48, %v1083_v47 }
 0x76d   : > { %v1087_v50 = vpop.permute.xlu1 %1086 }
 0x76e   : > { %v1093_v51 = vsel %vm1092_vm5, %v1091_v49, %v1087_v50 }
 0x76f   : > { %v1094_v52 = vpack.c.bf16 %v1093_v51, %v1093_v51 }
 0x771   : > { %1456 = vmatmul.mubr.bf16.vlgmr.msra.gmra.mxu0 %v1094_v52 }
 0x831   : > { %v1200_v54 = vpop.f32.mrf.mxu0 }
 0x832   : > { %v1201_v55 = vadd.f32 %v1326_v53, %v1200_v54 }
 0x833   : > { %v1457_v56 = vpop.f32.mrf.mxu0 }
 0x834   : > { %v1206_v57 = vadd.f32 %v1201_v55, %v1666_v0 }
 0x835   : > { %v1203_v32 = vpop.f32.mrf.mxu0 }
 0x836   : > { %1207 = vst [vmem:[%s329_s12] sm:$0xff] %v1206_v57 }
 0x837   : > { %v1458_v58 = vpop.f32.mrf.mxu0 }
 0x838 PF: > { %s19_s27 = sadd.s32 1, %s1580_s27  }
 0x839   : > { %p16_p1 = scmp.ge.s32.totalorder %s19_s27, 4  }
 0x83b   :  { %18 = sbr.rel (!%p16_p1) target bundleno = 1 (0x1), region = 90 }
 0x840   :  { %1227 = vsyncpa [#allocation3], 1 }
 0x841   :  { %1229 = vsyncpa [#allocation3 + $0x1], 1 }

// kernel: fwd.8
= control target key start
LH: loop header
LB: loop body
LE: loop exit
PB: predicated region body
PF: predicated region fallthrough
CT: control target
= control target key end

     0   :  { %s1561_s27 = smov 0   ;;  %s1798_s0 = inlined_call_operand.vmem [shape: f32[2,8,128], index: 0, kind: input, shape index: {}]   ;;  %s1799_s1 = inlined_call_operand.vmem [shape: f32[1,128], index: 1, kind: input, shape index: {}]   ;;  %s1800_s2 = inlined_call_operand.vmem [shape: f32[1,128], index: 2, kind: input, shape index: {}]   ;;  %s1801_s3 = inlined_call_operand.vmem [shape: bf16[128,384], index: 3, kind: input, shape index: {}]   ;;  %s1802_s4 = inlined_call_operand.vmem [shape: f32[1,384], index: 4, kind: input, shape index: {}]   ;;  %s1803_s5 = inlined_call_operand.vmem [shape: bf16[128,128], index: 5, kind: input, shape index: {}]   ;;  %s1804_s6 = inlined_call_operand.vmem [shape: f32[1,128], index: 6, kind: input, shape index: {}]   ;;  %s1805_s7 = inlined_call_operand.vmem [shape: f32[2,1,8], index: 7, kind: input, shape index: {}]   ;;  %s1806_s8 = inlined_call_operand.vmem [shape: f32[2,8,128], index: 8, kind: output, shape index: {}]  }
   0x1 LB: > { %s1255_s28 = sadd.s32 4294967295, %s1508_s27   ;;  %p1259_p0 = scmp.ge.s32.totalorder %s1508_s27, 1  ;;  %s1508_s27 = sphi %s1561_s27, %s18_s27  }
   0x2   : > { %p269_p1 = scmp.lt.s32.totalorder %s1508_s27, 3 }
   0x4   : > { %p270_p2 = pnand %p1259_p0, %p269_p1 }
   0x5   : > { %p304_p3 = scmp.lt.s32.totalorder (!%p270_p2), %s1255_s28, 1  ;;  %s1513_s30 = smov (!%p270_p2), 96  }
   0x6   : > { %273 = sbr.rel (%p270_p2) target bundleno = 2086 (0x826), region = 52  ;;  %s1514_s9 = smov (!%p270_p2), 32  }
   0x7   : > { %s1515_s13 = smov (!%p270_p2), 64  }
   0xb   : > { %s1808_s28 = smov (!%p304_p3, %s1255_s28), 1  ;;  %v1444_v1 = vld [vmem:[%s1801_s3 + $0xac] ss:$12 sps:$4 sm:$0xff]   ;;  %v1446_v2 = vld [vmem:[%s1801_s3 + $0xa8] ss:$12 sps:$4 sm:$0xff]   ;;  %v1510_v3 = vmov 0.0   ;;  %v380_v41 = vlaneseq }
   0xc   : > { %s1260_s29 = sshll.u32 %s1808_s28, 3  ;;  %1342 = vmatprep.subr.bf16.mxu1 %v1510_v3  ;;  %v1447_v4 = vld [vmem:[%s1801_s3 + $0xb0] ss:$12 sps:$4 sm:$0xff]   ;;  %v1448_v5 = vld [vmem:[%s1801_s3 + $0x94] ss:$12 sps:$4 sm:$0xff]   ;;  %523 = vmatprep.subr.bf16.mxu0 %v1444_v1  ;;  %v1511_v22 = vmov 0   ;;  %s310_s12 = scalar_lea.vmem %s1805_s7, %s1808_s28 }
   0xd   : > { %s307_s10 = scalar_lea.vmem %s1798_s0, %s1260_s29  ;;  %524 = vmatpush1.bf16.msra.mxu0 %v1446_v2  ;;  %1343 = vmatpush3.bf16.msra.mxu1 %v1447_v4  ;;  %v1450_v6 = vld [vmem:[%s1801_s3 + $0x90] ss:$12 sps:$4 sm:$0xff]   ;;  %v1451_v7 = vld [vmem:[%s1801_s3 + $0x98] ss:$12 sps:$4 sm:$0xff]   ;;  %v1455_v14 = vld [vmem:[%s1801_s3 + $0x80] ss:$12 sps:$4 sm:$0xff]   ;;  %s314_s15 = scalar_lea.vmem %s1806_s8, %s1260_s29 }
   0xe   : > { %v1577_v0 = vld [vmem:[%s307_s10] sm:$0xff]  ;;  %525 = vmatprep.subr.bf16.mxu0 %v1448_v5  ;;  %1344 = vmatprep.subr.bf16.mxu1 %v1510_v3  ;;  %v1452_v12 = vld [vmem:[%s1801_s3 + $0x7c] ss:$12 sps:$4 sm:$0xff]   ;;  %v1460_v18 = vld [vmem:[%s1801_s3 + $0x4c] ss:$12 sps:$4 sm:$0xff]   ;;  %vm1512_vm0 = vmmov 0  }
   0xf   : > { %319 = vadd.xlane.f32.xlu0 %v1577_v0  ;;  %v1454_v13 = vld [vmem:[%s1801_s3 + $0x78] ss:$12 sps:$4 sm:$0xff]   ;;  %v1458_v16 = vld [vmem:[%s1801_s3 + $0x60] ss:$12 sps:$4 sm:$0xff]   ;;  %v1459_v17 = vld [vmem:[%s1801_s3 + $0x68] ss:$12 sps:$4 sm:$0xff]   ;;  %555 = vmatprep.mubr.bf16.mxu0 %v1511_v22 }
  0x10   : > { %v1456_v15 = vld [vmem:[%s1801_s3 + $0x64] ss:$12 sps:$4 sm:$0xff]   ;;  %v1462_v19 = vld [vmem:[%s1801_s3 + $0x48] ss:$12 sps:$4 sm:$0xff]   ;;  %1358 = vmatprep.mubr.msk.bf16.mxu1 %vm1512_vm0, %v1510_v3  ;;  %v1471_v27 = vld [vmem:[%s1801_s3 + $0x20] ss:$12 sps:$4 sm:$0xff]  }
  0x11   : > { %526 = vmatpush1.bf16.msra.mxu0 %v1450_v6  ;;  %1345 = vmatpush3.bf16.msra.mxu1 %v1451_v7  ;;  %v1463_v20 = vld [vmem:[%s1801_s3 + $0x50] ss:$12 sps:$4 sm:$0xff]   ;;  %v1464_v21 = vld [vmem:[%s1801_s3 + $0x34] ss:$12 sps:$4 sm:$0xff]   ;;  %v1467_v24 = vld [vmem:[%s1801_s3 + $0x38] ss:$12 sps:$4 sm:$0xff]  }
  0x12   : > { %1346 = vmatprep.subr.bf16.mxu1 %v1510_v3  ;;  %527 = vmatprep.subr.bf16.mxu0 %v1452_v12  ;;  %v1466_v23 = vld [vmem:[%s1801_s3 + $0x30] ss:$12 sps:$4 sm:$0xff]   ;;  %v1470_v26 = vld [vmem:[%s1801_s3 + $0x18] ss:$12 sps:$4 sm:$0xff]   ;;  %v1474_v29 = vld [vmem:[%s1801_s3] ss:$12 sps:$4 sm:$0xff]  }
  0x13   : > { %v1468_v25 = vld [vmem:[%s1801_s3 + $0x1c] ss:$12 sps:$4 sm:$0xff]   ;;  %v1472_v28 = vld [vmem:[%s1801_s3 + $0x4] ss:$12 sps:$4 sm:$0xff]   ;;  %v1262_v35 = vld [vmem:[%s1799_s1] ss:$0 sm:$0xff] }
  0x14   : > { %v1475_v30 = vld [vmem:[%s1801_s3 + $0x8] ss:$12 sps:$4 sm:$0xff]   ;;  %v1263_v37 = vld [vmem:[%s1800_s2] ss:$0 sm:$0xff]  ;;  %v381_v42 = vshrl.u32 %v380_v41, 7  ;;  %vm608_vm1 = vcmask 261120  }
  0x15   : > { %528 = vmatpush1.bf16.msra.mxu0 %v1454_v13  ;;  %1347 = vmatpush3.bf16.msra.mxu1 %v1455_v14  ;;  %v378_v44 = vld [vmem:[%s1802_s4] sm:$0x7]  ;;  %vm679_vm2 = vcmask 1043456   ;;  %vm663_vm3 = vcmask 64512   ;;  %vm1075_vm4 = vcmask 523264   ;;  %vm1077_vm5 = vcmask 785408  }
  0x16   : > { %1348 = vmatprep.subr.bf16.mxu1 %v1510_v3  ;;  %529 = vmatprep.subr.bf16.mxu0 %v1456_v15  ;;  %v386_v43 = vsub.s32 1, %v381_v42  ;;  %v390_v45 = vsub.s32 2, %v381_v42  ;;  %v382_v49 = vsub.s32 0, %v381_v42  ;;  %v1694_v5 = vld [vmem:[%s310_s12] ss:$0 sm:$0xff] }
  0x18   : > { %v387_v46 = vrot.slane %v378_v44, %v386_v43  ;;  %v391_v52 = vrot.slane %v378_v44, %v390_v45  ;;  %v383_v56 = vrot.slane %v378_v44, %v382_v49 }
  0x19   : > { %530 = vmatpush1.bf16.msra.mxu0 %v1458_v16  ;;  %1349 = vmatpush3.bf16.msra.mxu1 %v1459_v17 }
  0x1a   : > { %531 = vmatprep.subr.bf16.mxu0 %v1460_v18  ;;  %1350 = vmatprep.subr.bf16.mxu1 %v1510_v3 }
  0x1d   : > { %532 = vmatpush1.bf16.msra.mxu0 %v1462_v19  ;;  %1351 = vmatpush3.bf16.msra.mxu1 %v1463_v20 }
  0x1e   : > { %533 = vmatprep.subr.bf16.mxu0 %v1464_v21  ;;  %1352 = vmatprep.subr.bf16.mxu1 %v1510_v3 }
  0x21   : > { %534 = vmatpush1.bf16.msra.mxu0 %v1466_v23  ;;  %1353 = vmatpush3.bf16.msra.mxu1 %v1467_v24 }
  0x22   : > { %535 = vmatprep.subr.bf16.mxu0 %v1468_v25  ;;  %1354 = vmatprep.subr.bf16.mxu1 %v1510_v3 }
  0x25   : > { %536 = vmatpush1.bf16.msra.mxu0 %v1470_v26  ;;  %1355 = vmatpush3.bf16.msra.mxu1 %v1471_v27 }
  0x26   : > { %537 = vmatprep.subr.bf16.mxu0 %v1472_v28  ;;  %1356 = vmatprep.subr.bf16.mxu1 %v1510_v3 }
  0x29   : > { %538 = vmatpush1.bf16.msra.mxu0 %v1474_v29  ;;  %1357 = vmatpush3.bf16.msra.mxu1 %v1475_v30 }
  0x2a   : > { %1362 = vmatprep.subr.bf16.mxu1 %v1510_v3  ;;  %1386 = vmatprep.subr.bf16.mxu0 %v1510_v3 }
  0x98   : > { %v320_v8 = vpop.xlane.xlu0 %319 }
  0x99   : > { %v322_v9 = vmul.f32 0.0078125, %v320_v8 }
  0x9b   : > { %v323_v10 = vsub.f32 %v1577_v0, %v322_v9 }
  0x9d   : > { %v324_v11 = vmul.f32 %v323_v10, %v323_v10 }
  0x9f   : > { %325 = vadd.xlane.f32.xlu0 %v324_v11 }
 0x128   : > { %v326_v31 = vpop.xlane.xlu0 %325 }
 0x129   : > { %v327_v32 = vmul.f32 0.0078125, %v326_v31 }
 0x12b   : > { %v328_v33 = vadd.f32 1e-05, %v327_v32 }
 0x12d   : > { %1484 = vrsqrt.f32 %v328_v33 }
 0x13a   : > { %v1485_v34 = vpop.eup %1484 }
 0x13b   : > { %v330_v36 = vmul.f32 %v1485_v34, %v323_v10 }
 0x13d   : > { %v337_v38 = vmul.f32 %v1262_v35, %v330_v36 }
 0x13f   : > { %v344_v39 = vadd.f32 %v1263_v37, %v337_v38 }
 0x141   : > { %v345_v40 = vpack.c.bf16 %v344_v39, %v344_v39 }
 0x143   : > { %556 = vmatmul.mubr.bf16.vlgmr.msra.gmra.mxu0 %v345_v40  ;;  %1359 = vmatmul.mubr.bf16.vlgmr.msra.gmra.mxu1 %v345_v40 }
 0x144   : > { %1364 = vmatprep.mubr.msk.bf16.mxu1 %vm1512_vm0, %v1510_v3  ;;  %1388 = vmatprep.mubr.msk.bf16.mxu0 %vm1512_vm0, %v1510_v3 }
 0x203   : > { %v557_v47 = vpop.f32.mrf.mxu0  ;;  %v598_v48 = vpop.f32.mrf.mxu1 }
 0x204   : > { %v599_v60 = vadd.f32 %v598_v48, %v391_v52  ;;  %v558_v62 = vadd.f32 %v557_v47, %v383_v56 }
 0x205   : > { %v559_v50 = vpop.f32.mrf.mxu0  ;;  %v1360_v51 = vpop.f32.mrf.mxu1 }
 0x206   : > { %v560_v53 = vadd.f32 %v559_v50, %v387_v46  ;;  %v1681_v63 = vpack.c.bf16 %v599_v60, %v599_v60  ;;  %v605_v1 = vpack.c.bf16 %v558_v62, %v558_v62 }
 0x207   : > { %v561_v54 = vpop.f32.mrf.mxu0  ;;  %v601_v55 = vpop.f32.mrf.mxu1 }
 0x208   : > { %v606_v57 = vpack.c.bf16 %v560_v53, %v560_v53  ;;  %v681_v2 = vsel %vm679_vm2, %v1681_v63, 0 }
 0x209   : > { %v562_v58 = vpop.f32.mrf.mxu0  ;;  %v1361_v59 = vpop.f32.mrf.mxu1 }
 0x20a   : > { %727 = vrot.lane.b32.xlu0 %v606_v57, %s1513_s30  ;;  %v613_v61 = vsel %vm608_vm1, %v606_v57, 0 }
 0x20b   : > { %1363 = vmatpush3.bf16.xpose.msra.mxu1 %v613_v61 }
 0x20c   : > { %1368 = vmatprep.subr.bf16.mxu1 %v1510_v3 }
 0x20e   : > { %952 = vrot.lane.b32.xlu0 %v606_v57, %s1514_s9 }
 0x212   : > { %1365 = vmatmul.mubr.msk.bf16.vlgmr.msra.gmra.mxu1 %vm608_vm1, %v605_v1 }
 0x213   : > { %1369 = vmatpush3.bf16.msra.mxu1 %v681_v2  ;;  %1370 = vmatprep.mubr.msk.bf16.mxu1 %vm1512_vm0, %v1510_v3 }
 0x214   : > { %1374 = vmatprep.subr.bf16.mxu1 %v1510_v3 }
 0x27c   : > { %v728_v19 = vpop.permute.xlu0 %727 }
 0x27d   : > { %v733_v28 = vsel %vm608_vm1, %v728_v19, 0 }
 0x280   : > { %v953_v23 = vpop.permute.xlu0 %952 }
 0x281   : > { %v958_v26 = vsel %vm608_vm1, %v953_v23, 0 }
 0x2d2   : > { %v649_v4 = vpop.f32.mrf.mxu1 }
 0x2d3   : > { %v655_v6 = vmul.f32 0.17677669, %v649_v4 }
 0x2d4   : > { %v1366_v7 = vpop.f32.mrf.mxu1 }
 0x2d5   : > { %v662_v8 = vadd.f32 %v1694_v5, %v655_v6 }
 0x2d6   : > { %v652_v9 = vpop.f32.mrf.mxu1 }
 0x2d7   : > { %v664_v10 = vsel %vm663_vm3, %v662_v8, -inf }
 0x2d8   : > { %665 = vmax.xlane.f32.xlu1 %v664_v10  ;;  %v1367_v11 = vpop.f32.mrf.mxu1 }
 0x361   : > { %v666_v12 = vpop.xlane.xlu1 %665 }
 0x362   : > { %v667_v13 = vsub.f32 %v662_v8, %v666_v12 }
 0x364   : > { %v668_v14 = vmul.f32 1.442695, %v667_v13 }
 0x366   : > { %1486 = vpow2.f32 %v668_v14 }
 0x373   : > { %v1487_v15 = vpop.eup %1486 }
 0x374   : > { %v670_v16 = vsel %vm663_vm3, %v1487_v15, 0.0 }
 0x375   : > { %671 = vadd.xlane.f32.xlu1 %v670_v16 }
 0x386   : > { %724 = vrot.lane.b32.xlu1 %v605_v1, %s1513_s30 }
 0x38a   : > { %840 = vrot.lane.b32.xlu1 %v606_v57, %s1515_s13 }
 0x38e   : > { %838 = vrot.lane.b32.xlu1 %v605_v1, %s1515_s13 }
 0x392   : > { %950 = vrot.lane.b32.xlu1 %v605_v1, %s1514_s9 }
 0x3fe   : > { %v672_v17 = vpop.xlane.xlu1 %671 }
 0x3ff   : > { %1488 = vrcp.f32 %v672_v17 }
 0x402   : > { %v725_v18 = vpop.permute.xlu1 %724 }
 0x406   : > { %v841_v20 = vpop.permute.xlu1 %840 }
 0x407   : > { %v846_v21 = vsel %vm608_vm1, %v841_v20, 0 }
 0x408   : > { %1387 = vmatpush3.bf16.xpose.msra.mxu0 %v846_v21 }
 0x409   : > { %1398 = vmatprep.subr.bf16.mxu0 %v1510_v3 }
 0x40a   : > { %v839_v25 = vpop.permute.xlu1 %838 }
 0x40c   : > { %v1489_v22 = vpop.eup %1488 }
 0x40d   : > { %v674_v24 = vmul.f32 %v1489_v22, %v1487_v15 }
 0x40e   : > { %v951_v29 = vpop.permute.xlu1 %950 }
 0x40f   : > { %1389 = vmatmul.mubr.msk.bf16.vlgmr.msra.gmra.mxu0 %vm608_vm1, %v839_v25  ;;  %v675_v27 = vpack.c.bf16 %v674_v24, %v674_v24 }
 0x410   : > { %1399 = vmatpush3.bf16.xpose.msra.mxu0 %v958_v26  ;;  %1400 = vmatprep.mubr.msk.bf16.mxu0 %vm1512_vm0, %v1510_v3  ;;  %v1476_v26 = vld [vmem:[%s1803_s5 + $0x38] sm:$0xff]  }
 0x411   : > { %1371 = vmatmul.mubr.msk.bf16.vlgmr.msra.gmra.mxu1 %vm663_vm3, %v675_v27  ;;  %1410 = vmatprep.subr.bf16.mxu0 %v1510_v3  ;;  %v1477_v27 = vld [vmem:[%s1803_s5 + $0x30] sm:$0xff]  }
 0x412   : > { %1375 = vmatpush3.bf16.xpose.msra.mxu1 %v733_v28  ;;  %1376 = vmatprep.mubr.msk.bf16.mxu1 %vm1512_vm0, %v1510_v3  ;;  %v1478_v28 = vld [vmem:[%s1803_s5 + $0x28] sm:$0xff]  }
 0x413   : > { %1380 = vmatprep.subr.bf16.mxu1 %v1510_v3 }
 0x417   : > { %1401 = vmatmul.mubr.msk.bf16.vlgmr.msra.gmra.mxu0 %vm608_vm1, %v951_v29  ;;  %v1479_v29 = vld [vmem:[%s1803_s5 + $0x20] sm:$0xff]  }
 0x418   : > { %1426 = vmatprep.mubr.msk.bf16.mxu0 %vm1512_vm0, %v1510_v3  ;;  %1411 = vmatpush3.bf16.msra.mxu0 %v1476_v26 }
 0x419   : > { %1377 = vmatmul.mubr.msk.bf16.vlgmr.msra.gmra.mxu1 %vm608_vm1, %v725_v18  ;;  %1412 = vmatprep.subr.bf16.mxu0 %v1510_v3 }
 0x41a   : > { %1382 = vmatprep.mubr.msk.bf16.mxu1 %vm1512_vm0, %v1510_v3 }
 0x41c   : > { %1413 = vmatpush3.bf16.msra.mxu0 %v1477_v27 }
 0x41d   : > { %1414 = vmatprep.subr.bf16.mxu0 %v1510_v3 }
 0x420   : > { %1415 = vmatpush3.bf16.msra.mxu0 %v1478_v28 }
 0x421   : > { %1416 = vmatprep.subr.bf16.mxu0 %v1510_v3 }
 0x424   : > { %1417 = vmatpush3.bf16.msra.mxu0 %v1479_v29 }
 0x425   : > { %1418 = vmatprep.subr.bf16.mxu0 %v1510_v3 }
 0x4cf   : > { %v882_v30 = vpop.f32.mrf.mxu0 }
 0x4d0   : > { %v888_v31 = vmul.f32 0.17677669, %v882_v30  ;;  %v1480_v30 = vld [vmem:[%s1803_s5 + $0x18] sm:$0xff]  }
 0x4d1   : > { %v1721_v32 = vpop.f32.mrf.mxu1  ;;  %v1390_v33 = vpop.f32.mrf.mxu0  ;;  %1419 = vmatpush3.bf16.msra.mxu0 %v1480_v30 }
 0x4d2   : > { %v889_v34 = vadd.f32 %v1694_v5, %v888_v31  ;;  %1420 = vmatprep.subr.bf16.mxu0 %v1510_v3  ;;  %v1481_v31 = vld [vmem:[%s1803_s5 + $0x10] sm:$0xff]   ;;  %v1482_v33 = vld [vmem:[%s1803_s5 + $0x8] sm:$0xff]  }
 0x4d3   : > { %v1372_v35 = vpop.f32.mrf.mxu1  ;;  %v885_v36 = vpop.f32.mrf.mxu0 }
 0x4d4   : > { %v890_v37 = vsel %vm663_vm3, %v889_v34, -inf  ;;  %v1483_v36 = vld [vmem:[%s1803_s5] sm:$0xff]  }
 0x4d5   : > { %891 = vmax.xlane.f32.xlu1 %v890_v37  ;;  %v720_v38 = vpop.f32.mrf.mxu1  ;;  %v1391_v39 = vpop.f32.mrf.mxu0  ;;  %1421 = vmatpush3.bf16.msra.mxu0 %v1481_v31 }
 0x4d6   : > { %1422 = vmatprep.subr.bf16.mxu0 %v1510_v3 }
 0x4d7   : > { %v1373_v40 = vpop.f32.mrf.mxu1  ;;  %v994_v41 = vpop.f32.mrf.mxu0 }
 0x4d8   : > { %v1000_v44 = vmul.f32 0.17677669, %v994_v41 }
 0x4d9   : > { %v769_v42 = vpop.f32.mrf.mxu1  ;;  %v1402_v43 = vpop.f32.mrf.mxu0  ;;  %1423 = vmatpush3.bf16.msra.mxu0 %v1482_v33 }
 0x4da   : > { %v775_v45 = vmul.f32 0.17677669, %v769_v42  ;;  %v1001_v52 = vadd.f32 %v1694_v5, %v1000_v44  ;;  %1424 = vmatprep.subr.bf16.mxu0 %v1510_v3 }
 0x4db   : > { %v1378_v46 = vpop.f32.mrf.mxu1  ;;  %v997_v47 = vpop.f32.mrf.mxu0 }
 0x4dc   : > { %v776_v48 = vadd.f32 %v1694_v5, %v775_v45  ;;  %v1002_v54 = vsel %vm663_vm3, %v1001_v52, -inf }
 0x4dd   : > { %v772_v49 = vpop.f32.mrf.mxu1  ;;  %v1403_v50 = vpop.f32.mrf.mxu0  ;;  %1425 = vmatpush3.bf16.msra.mxu0 %v1483_v36 }
 0x4de   : > { %v777_v51 = vsel %vm663_vm3, %v776_v48, -inf }
 0x4df   : > { %778 = vmax.xlane.f32.xlu0 %v777_v51  ;;  %v1379_v53 = vpop.f32.mrf.mxu1 }
 0x4e0   : > { %v1297_v53 = vld [vmem:[%s1804_s6] ss:$0 sm:$0xff] }
 0x4e3   : > { %1003 = vmax.xlane.f32.xlu0 %v1002_v54 }
 0x55e   : > { %v892_v55 = vpop.xlane.xlu1 %891 }
 0x55f   : > { %v893_v56 = vsub.f32 %v889_v34, %v892_v55 }
 0x561   : > { %v894_v57 = vmul.f32 1.442695, %v893_v56 }
 0x563   : > { %1490 = vpow2.f32 %v894_v57 }
 0x568   : > { %v779_v58 = vpop.xlane.xlu0 %778 }
 0x569   : > { %v780_v59 = vsub.f32 %v776_v48, %v779_v58 }
 0x56b   : > { %v781_v60 = vmul.f32 1.442695, %v780_v59 }
 0x56c   : > { %v1004_v61 = vpop.xlane.xlu0 %1003 }
 0x56d   : > { %1492 = vpow2.f32 %v781_v60  ;;  %v1005_v62 = vsub.f32 %v1001_v52, %v1004_v61 }
 0x56f   : > { %v1006_v1 = vmul.f32 1.442695, %v1005_v62 }
 0x570   : > { %v1491_v2 = vpop.eup %1490 }
 0x571   : > { %1494 = vpow2.f32 %v1006_v1  ;;  %v896_v4 = vsel %vm663_vm3, %v1491_v2, 0.0 }
 0x572   : > { %897 = vadd.xlane.f32.xlu0 %v896_v4 }
 0x57a   : > { %v1493_v5 = vpop.eup %1492 }
 0x57b   : > { %v783_v6 = vsel %vm663_vm3, %v1493_v5, 0.0 }
 0x57c   : > { %784 = vadd.xlane.f32.xlu0 %v783_v6 }
 0x57e   : > { %v1495_v7 = vpop.eup %1494 }
 0x57f   : > { %v1008_v8 = vsel %vm663_vm3, %v1495_v7, 0.0 }
 0x580   : > { %1009 = vadd.xlane.f32.xlu1 %v1008_v8 }
 0x591   : > { %902 = vrot.lane.b32.xlu1 %v1681_v63, %s1515_s13 }
 0x592   : > { %790 = vrot.lane.b32.xlu0 %v1681_v63, %s1513_s30 }
 0x595   : > { %1014 = vrot.lane.b32.xlu1 %v1681_v63, %s1514_s9 }
 0x5fb   : > { %v898_v9 = vpop.xlane.xlu0 %897 }
 0x605   : > { %v785_v10 = vpop.xlane.xlu0 %784 }
 0x606   : > { %1496 = vrcp.f32 %v785_v10 }
 0x607   : > { %1498 = vrcp.f32 %v898_v9 }
 0x609   : > { %v791_v11 = vpop.permute.xlu0 %790  ;;  %v1010_v13 = vpop.xlane.xlu1 %1009 }
 0x60a   : > { %v796_v12 = vsel %vm679_vm2, %v791_v11, 0  ;;  %1500 = vrcp.f32 %v1010_v13 }
 0x60b   : > { %1381 = vmatpush3.bf16.msra.mxu1 %v796_v12 }
 0x60c   : > { %1392 = vmatprep.subr.bf16.mxu1 %v1510_v3 }
 0x60d   : > { %v903_v16 = vpop.permute.xlu1 %902 }
 0x60e   : > { %v908_v19 = vsel %vm679_vm2, %v903_v16, 0 }
 0x611   : > { %v1015_v20 = vpop.permute.xlu1 %1014 }
 0x612   : > { %v1020_v23 = vsel %vm679_vm2, %v1015_v20, 0 }
 0x613   : > { %v1497_v14 = vpop.eup %1496 }
 0x614   : > { %v787_v15 = vmul.f32 %v1497_v14, %v1493_v5  ;;  %v1499_v18 = vpop.eup %1498 }
 0x615   : > { %v900_v63 = vmul.f32 %v1499_v18, %v1491_v2 }
 0x616   : > { %v788_v17 = vpack.c.bf16 %v787_v15, %v787_v15 }
 0x617   : > { %v901_v21 = vpack.c.bf16 %v900_v63, %v900_v63  ;;  %v1501_v22 = vpop.eup %1500 }
 0x618   : > { %1383 = vmatmul.mubr.msk.bf16.vlgmr.msra.gmra.mxu1 %vm663_vm3, %v788_v17  ;;  %v1012_v24 = vmul.f32 %v1501_v22, %v1495_v7 }
 0x619   : > { %1393 = vmatpush3.bf16.msra.mxu1 %v908_v19  ;;  %1394 = vmatprep.mubr.msk.bf16.mxu1 %vm1512_vm0, %v1510_v3 }
 0x61a   : > { %1404 = vmatprep.subr.bf16.mxu1 %v1510_v3  ;;  %v1013_v25 = vpack.c.bf16 %v1012_v24, %v1012_v24 }
 0x620   : > { %1395 = vmatmul.mubr.msk.bf16.vlgmr.msra.gmra.mxu1 %vm663_vm3, %v901_v21 }
 0x621   : > { %1405 = vmatpush3.bf16.msra.mxu1 %v1020_v23  ;;  %1406 = vmatprep.mubr.msk.bf16.mxu1 %vm1512_vm0, %v1510_v3 }
 0x628   : > { %1407 = vmatmul.mubr.msk.bf16.vlgmr.msra.gmra.mxu1 %vm663_vm3, %v1013_v25 }
 0x6d8   : > { %v832_v34 = vpop.f32.mrf.mxu1 }
 0x6d9   : > { %1063 = vrot.lane.b32.xlu1 %v832_v34, %s1514_s9 }
 0x6da   : > { %v1384_v35 = vpop.f32.mrf.mxu1 }
 0x6dc   : > { %v835_v37 = vpop.f32.mrf.mxu1 }
 0x6de   : > { %v1385_v38 = vpop.f32.mrf.mxu1 }
 0x6e0   : > { %v944_v39 = vpop.f32.mrf.mxu1 }
 0x6e1   : > { %1067 = vrot.lane.b32.xlu0 %v944_v39, %s1515_s13 }
 0x6e2   : > { %v1396_v40 = vpop.f32.mrf.mxu1 }
 0x6e4   : > { %v947_v41 = vpop.f32.mrf.mxu1 }
 0x6e6   : > { %v1397_v42 = vpop.f32.mrf.mxu1 }
 0x6e8   : > { %v1056_v43 = vpop.f32.mrf.mxu1 }
 0x6e9   : > { %1071 = vrot.lane.b32.xlu1 %v1056_v43, %s1513_s30 }
 0x6ea   : > { %v1408_v44 = vpop.f32.mrf.mxu1 }
 0x6ec   : > { %v1059_v45 = vpop.f32.mrf.mxu1 }
 0x6ee   : > { %v1409_v3 = vpop.f32.mrf.mxu1 }
 0x74b   : > { %v1064_v46 = vpop.permute.xlu1 %1063 }
 0x74c   : > { %v1074_v48 = vsel %vm608_vm1, %v1721_v32, %v1064_v46 }
 0x753   : > { %v1068_v47 = vpop.permute.xlu0 %1067 }
 0x754   : > { %v1076_v49 = vsel %vm1075_vm4, %v1074_v48, %v1068_v47 }
 0x75b   : > { %v1072_v50 = vpop.permute.xlu1 %1071 }
 0x75c   : > { %v1078_v51 = vsel %vm1077_vm5, %v1076_v49, %v1072_v50 }
 0x75d   : > { %v1079_v52 = vpack.c.bf16 %v1078_v51, %v1078_v51 }
 0x75f   : > { %1427 = vmatmul.mubr.bf16.vlgmr.msra.gmra.mxu0 %v1079_v52 }
 0x81f   : > { %v1185_v54 = vpop.f32.mrf.mxu0 }
 0x820   : > { %v1186_v55 = vadd.f32 %v1297_v53, %v1185_v54 }
 0x821   : > { %v1428_v56 = vpop.f32.mrf.mxu0 }
 0x822   : > { %v1191_v57 = vadd.f32 %v1186_v55, %v1577_v0 }
 0x823   : > { %v1188_v32 = vpop.f32.mrf.mxu0 }
 0x824   : > { %1192 = vst [vmem:[%s314_s15] sm:$0xff] %v1191_v57 }
 0x825   : > { %v1429_v58 = vpop.f32.mrf.mxu0 }
 0x826 PF: > { %s18_s27 = sadd.s32 1, %s1508_s27  }
 0x827   : > { %p15_p4 = scmp.ge.s32.totalorder %s18_s27, 4  }
 0x829   :  { %17 = sbr.rel (!%p15_p4) target bundleno = 1 (0x1), region = 85 }

</bundles_post_ra>
